<compile_context>
chip_gen: v5e
topology: v5e:2x2
jax: 0.10.0
libtpu: 0.0.40
codegen_flags: <defaults>
</compile_context>

<pallas_src>
import jax
import jax.numpy as jnp
import numpy as np
from jax.experimental import pallas as pl
from jax.experimental.pallas import tpu as pltpu

HIDDEN = 32      # hidden_size
DEPTH = 3        # GRU message-passing depth
MAX_NB = 4       # MAX_NUM_NEIGHBORS
VOCAB = 20       # cluster-vocab size for the embedding table
LANE = 128       # TPU lane width


def _round_up(x, m):
    return (x + m - 1) // m * m


def jtnn_encoder_kernel(
    emb_ref, idx_ref, node_graph_ref, mess_graph_ref,
    wx_ref, bx_ref, wz_h_ref, wh_h_ref, ur_ref,
    wo_x_ref, wo_m_ref, bo_ref,
    node_ref, mess_ref,
):
    V, H = emb_ref.shape
    Np, _ = node_graph_ref.shape
    Ep, NB = mess_graph_ref.shape
    R = idx_ref.shape[0]                      # Np + Ep (both multiples of 8)
    f32 = jnp.float32

    # --- fused embedding gather: emb[fnode] and emb[fnode[fmess]] in ONE matmul
    onehot = (jax.lax.broadcasted_iota(jnp.int32, (R, V), 1)
              == idx_ref[...]).astype(f32)
    gathered = jnp.dot(onehot, emb_ref[...], preferred_element_type=f32)   # (R, H)
    fnode_emb = gathered[:Np, :]                                           # (Np, H)
    x = gathered[Np:, :]                                                   # (Ep, H)

    # --- stacked neighbor-gather matrix (NB*Ep, Ep); column 0 is zeroed so the
    #     padding message (row 0) never contributes (mask baked into gather).
    # TODO(synk): O(E^2) — replace with SMEM scalar-prefetch row gathers at scale.
    iota_ee = jax.lax.broadcasted_iota(jnp.int32, (Ep, Ep), 1)
    not_pad = iota_ee != 0
    g_stacked = jnp.concatenate(
        [jnp.logical_and(iota_ee == mess_graph_ref[:, j:j + 1], not_pad).astype(f32)
         for j in range(NB)], axis=0)                                      # (NB*Ep, Ep)

    # --- fused loop-invariant x-side projection: one lane-dense (Ep,128) matmul
    #     lanes [0:H)   = W_r x + b_r   (b_r slot carries U_r's bias; W_r is bias-free)
    #     lanes [H:2H)  = W_z x + b_z
    #     lanes [2H:3H) = W_h x + b_h
    x_proj = jnp.dot(x, wx_ref[...], preferred_element_type=f32) + bx_ref[...]
    r1 = x_proj[:, 0:H]
    xz = x_proj[:, H:2 * H]
    xh = x_proj[:, 2 * H:3 * H]

    wz_h = wz_h_ref[...]
    wh_h = wh_h_ref[...]
    ur = ur_ref[...]

    h = jnp.zeros((Ep, H), f32)
    # DEPTH=3: full unroll is fine; switch to lax.fori_loop(unroll=k) if it grows.
    for _ in range(DEPTH):
        h_nei_flat = jnp.dot(g_stacked, h, preferred_element_type=f32)    # (NB*Ep, H)
        u_flat = jnp.dot(h_nei_flat, ur, preferred_element_type=f32)      # (NB*Ep, H)
        h_nei = h_nei_flat.reshape(NB, Ep, H)
        u = u_flat.reshape(NB, Ep, H)
        sum_h = jnp.sum(h_nei, axis=0)                                     # (Ep, H)
        z = jax.nn.sigmoid(xz + jnp.dot(sum_h, wz_h, preferred_element_type=f32))
        r = jax.nn.sigmoid(r1 + u)                                         # bcast over NB
        sum_gated = jnp.sum(r * h_nei, axis=0)                             # (Ep, H)
        pre_h = jnp.tanh(xh + jnp.dot(sum_gated, wh_h, preferred_element_type=f32))
        h = (1.0 - z) * sum_h + z * pre_h

    # Padding-message mask applied exactly once (gathers already ignore row 0).
    # NOTE: must stay BEFORE the node_graph aggregation below — its one-hot
    # does NOT exclude index 0, so it relies on h[0] being zeroed here.
    mask = (jax.lax.broadcasted_iota(jnp.int32, (Ep, 1), 0) != 0).astype(f32)
    h = h * mask

    # lane-dense (Ep, 128) store for the message output
    mess_ref[...] = jnp.concatenate([h, jnp.zeros((Ep, LANE - H), f32)], axis=1)

    # --- node aggregation: sum of inward messages per node (node_graph) ---
    iota_ne = jax.lax.broadcasted_iota(jnp.int32, (Np, Ep), 1)
    agg = jnp.zeros((Np, Ep), f32)
    for j in range(NB):
        agg = agg + (iota_ne == node_graph_ref[:, j:j + 1]).astype(f32)
    mess_nei_sum = jnp.dot(agg, h, preferred_element_type=f32)             # (Np, H)

    # --- outputNN: ReLU(Linear(cat([fnode_emb, mess_nei_sum]))).  wo_x / wo_m /
    #     bo were zero-padded to 128 output lanes in the wrapper, so this single
    #     store is lane-dense for free (relu(0)=0 in the pad lanes).
    node_ref[...] = jnp.maximum(
        jnp.dot(fnode_emb, wo_x_ref[...], preferred_element_type=f32)
        + jnp.dot(mess_nei_sum, wo_m_ref[...], preferred_element_type=f32)
        + bo_ref[...], 0.0)                                                # (Np, 128)


def jtnn_encoder_forward(params, fnode, fmess, node_graph, mess_graph, roots):
    H = HIDDEN
    N = int(fnode.shape[0])
    E = int(fmess.shape[0])
    Np = _round_up(N, 8)
    Ep = _round_up(E, 8)

    fnode = fnode.astype(jnp.int32)
    fmess = fmess.astype(jnp.int32)
    # Compose the two-stage gather emb[fnode][fmess] -> emb[fnode[fmess]]
    # (integer-only).  NOTE: jnp.take clamps out-of-range indices instead of
    # raising (unlike PyTorch) — inputs are assumed valid.
    fmess_node = jnp.take(fnode, fmess)

    # Pad rows to multiples of 8 so every sublane slice / reshape in the kernel
    # stays on (8,128) tile boundaries.  Padded index rows point at message 0
    # (the padding message, masked inside the kernel) so they contribute nothing
    # and are sliced away below.
    fnode_p = jnp.zeros((Np,), jnp.int32).at[:N].set(fnode)
    fmess_node_p = jnp.zeros((Ep,), jnp.int32).at[:E].set(fmess_node)
    idx_stacked = jnp.concatenate([fnode_p, fmess_node_p]).reshape(Np + Ep, 1)
    node_graph_p = jnp.zeros((Np, MAX_NB), jnp.int32).at[:N].set(
        node_graph.astype(jnp.int32))
    mess_graph_p = jnp.zeros((Ep, MAX_NB), jnp.int32).at[:E].set(
        mess_graph.astype(jnp.int32))

    wz, wh, wo = params["wz"], params["wh"], params["wo"]
    # Fuse the three loop-invariant x-side projections + biases into one
    # lane-dense (H, 128) weight / (1, 128) bias.
    w_x = jnp.concatenate([params["wr"], wz[:H], wh[:H]], axis=1)        # (H, 3H)
    b_x = jnp.concatenate([params["br"], params["bz"], params["bh"]], axis=1)
    w_x = jnp.pad(w_x, ((0, 0), (0, LANE - 3 * H)))                      # (H, 128)
    b_x = jnp.pad(b_x, ((0, 0), (0, LANE - 3 * H)))                      # (1, 128)
    # Zero-pad the output projection to 128 lanes -> lane-dense node_vecs store.
    wo_x = jnp.pad(wo[:H], ((0, 0), (0, LANE - H)))                      # (H, 128)
    wo_m = jnp.pad(wo[H:], ((0, 0), (0, LANE - H)))                      # (H, 128)
    bo = jnp.pad(params["bo"], ((0, 0), (0, LANE - H)))                  # (1, 128)

    vmem = pl.BlockSpec(memory_space=pltpu.MemorySpace.VMEM)
    inputs = (params["emb"], idx_stacked, node_graph_p, mess_graph_p,
              w_x, b_x, wz[H:], wh[H:], params["ur"], wo_x, wo_m, bo)

    # TODO(synk): for production E add a grid over E-tiles with double-buffered
    # BlockSpecs + scalar-prefetch (SMEM) index tables; grid-less single shot is
    # latency-optimal at these toy sizes.
    node_vecs_pad, mess_pad = pl.pallas_call(
        jtnn_encoder_kernel,
        out_shape=(
            jax.ShapeDtypeStruct((Np, LANE), jnp.float32),
            jax.ShapeDtypeStruct((Ep, LANE), jnp.float32),
        ),
        in_specs=[vmem] * len(inputs),
        out_specs=(vmem, vmem),
        compiler_params=pltpu.CompilerParams(vmem_limit_bytes=32 * 1024 * 1024),
    )(*inputs)

    node_vecs = node_vecs_pad[:N, :H]
    messages = mess_pad[:E, :H]
    # Root selection moved out of the kernel (free gather in XLA).
    tree_vecs = node_vecs[roots]
    return tree_vecs, messages


def jtnn_encoder_reference(params, fnode, fmess, node_graph, mess_graph, roots):
    """Pure-JAX reference mirroring the PyTorch forward exactly."""
    H = HIDDEN
    E = fmess.shape[0]
    fnode_emb = params["emb"][fnode]                       # embedding lookup
    x = fnode_emb[fmess]                                   # index_select_ND
    h = jnp.zeros((E, H), jnp.float32)
    mask = jnp.ones((E, 1), jnp.float32).at[0, 0].set(0.0)
    for _ in range(DEPTH):
        h_nei = h[mess_graph]                              # (E, NB, H)
        sum_h = h_nei.sum(axis=1)
        z = jax.nn.sigmoid(jnp.concatenate([x, sum_h], 1) @ params["wz"] + params["bz"])
        r1 = (x @ params["wr"])[:, None, :]
        r2 = h_nei @ params["ur"] + params["br"]
        r = jax.nn.sigmoid(r1 + r2)
        sum_gated = (r * h_nei).sum(axis=1)
        pre_h = jnp.tanh(jnp.concatenate([x, sum_gated], 1) @ params["wh"] + params["bh"])
        h = (1.0 - z) * sum_h + z * pre_h
        h = h * mask
    mess_nei = h[node_graph].sum(axis=1)
    node_vecs = jax.nn.relu(
        jnp.concatenate([fnode_emb, mess_nei], 1) @ params["wo"] + params["bo"])
    return node_vecs[roots], h


if __name__ == "__main__":
    key = jax.random.PRNGKey(0)
    H, V = HIDDEN, VOCAB
    N = 10          # num nodes
    E = 16          # num messages (row 0 is the padding message)
    B = 2           # batch (number of trees)
    scope = [(0, 5), (5, 5)]
    roots = jnp.array([st for st, _ in scope], dtype=jnp.int32)

    ks = jax.random.split(key, 12)
    params = {
        "emb": jax.random.normal(ks[0], (V, H), jnp.float32) * 0.5,
        "wz": jax.random.normal(ks[1], (2 * H, H), jnp.float32) * 0.2,
        "bz": jax.random.normal(ks[2], (1, H), jnp.float32) * 0.1,
        "wr": jax.random.normal(ks[3], (H, H), jnp.float32) * 0.2,
        "ur": jax.random.normal(ks[4], (H, H), jnp.float32) * 0.2,
        "br": jax.random.normal(ks[5], (1, H), jnp.float32) * 0.1,
        "wh": jax.random.normal(ks[6], (2 * H, H), jnp.float32) * 0.2,
        "bh": jax.random.normal(ks[7], (1, H), jnp.float32) * 0.1,
        "wo": jax.random.normal(ks[8], (2 * H, H), jnp.float32) * 0.2,
        "bo": jax.random.normal(ks[9], (1, H), jnp.float32) * 0.1,
    }

    fnode = jax.random.randint(ks[10], (N,), 0, V, dtype=jnp.int32)
    kk = jax.random.split(ks[11], 3)
    fmess = jax.random.randint(kk[0], (E,), 0, N, dtype=jnp.int32).at[0].set(0)
    mess_graph = jax.random.randint(kk[1], (E, MAX_NB), 0, E, dtype=jnp.int32)
    mess_graph = mess_graph.at[0, :].set(0)                 # padding-message row
    node_graph = jax.random.randint(kk[2], (N, MAX_NB), 0, E, dtype=jnp.int32)

    tree_vecs, messages = jtnn_encoder_forward(
        params, fnode, fmess, node_graph, mess_graph, roots)
    jax.block_until_ready((tree_vecs, messages))

    ref_tree, ref_mess = jtnn_encoder_reference(
        params, fnode, fmess, node_graph, mess_graph, roots)
    np.testing.assert_allclose(np.asarray(messages), np.asarray(ref_mess),
                               rtol=1e-4, atol=1e-4)
    np.testing.assert_allclose(np.asarray(tree_vecs), np.asarray(ref_tree),
                               rtol=1e-4, atol=1e-4)

    print("KERNEL_OK")
</pallas_src>

<mosaic_0001>
module attributes {stable_mosaic.version = 11 : i64} {
  func.func @jtnn_encoder_kernel(%arg0: memref<20x32xf32, #tpu.memory_space<vmem>>, %arg1: memref<32x1xi32, #tpu.memory_space<vmem>>, %arg2: memref<16x4xi32, #tpu.memory_space<vmem>>, %arg3: memref<16x4xi32, #tpu.memory_space<vmem>>, %arg4: memref<32x128xf32, #tpu.memory_space<vmem>>, %arg5: memref<1x128xf32, #tpu.memory_space<vmem>>, %arg6: memref<32x32xf32, #tpu.memory_space<vmem>>, %arg7: memref<32x32xf32, #tpu.memory_space<vmem>>, %arg8: memref<32x32xf32, #tpu.memory_space<vmem>>, %arg9: memref<32x128xf32, #tpu.memory_space<vmem>>, %arg10: memref<32x128xf32, #tpu.memory_space<vmem>>, %arg11: memref<1x128xf32, #tpu.memory_space<vmem>>, %arg12: memref<16x128xf32, #tpu.memory_space<vmem>>, %arg13: memref<16x128xf32, #tpu.memory_space<vmem>>) attributes {dimension_semantics = [], scalar_prefetch = 0 : i64, scratch_operands = 0 : i64, tpu.core_type = #tpu.core_type<tc>} {
    %0 = tpu.iota {dimensions = array<i32: 1>} : vector<32x20xi32>
    %c0 = arith.constant 0 : index
    %c0_0 = arith.constant 0 : index
    %1 = vector.load %arg1[%c0, %c0_0] : memref<32x1xi32, #tpu.memory_space<vmem>>, vector<32x1xi32>
    %2 = vector.broadcast %1 : vector<32x1xi32> to vector<32x20xi32>
    %3 = arith.cmpi eq, %0, %2 : vector<32x20xi32>
    %4 = arith.extui %3 : vector<32x20xi1> to vector<32x20xi32>
    %5 = arith.sitofp %4 : vector<32x20xi32> to vector<32x20xf32>
    %c0_1 = arith.constant 0 : index
    %c0_2 = arith.constant 0 : index
    %6 = vector.load %arg0[%c0_1, %c0_2] : memref<20x32xf32, #tpu.memory_space<vmem>>, vector<20x32xf32>
    %cst = arith.constant dense<0.000000e+00> : vector<32x32xf32>
    %7 = tpu.matmul %5, %6, %cst {dimension_numbers = #tpu.dot_dimension_numbers<[1], [0], [0], [1], [0, 0, 1, 1], [], []>} : vector<32x20xf32>, vector<20x32xf32>, vector<32x32xf32> -> vector<32x32xf32>
    %8 = vector.extract_strided_slice %7 {offsets = [0, 0], sizes = [16, 32], strides = [1, 1]} : vector<32x32xf32> to vector<16x32xf32>
    %9 = vector.extract_strided_slice %7 {offsets = [16, 0], sizes = [16, 32], strides = [1, 1]} : vector<32x32xf32> to vector<16x32xf32>
    %10 = tpu.iota {dimensions = array<i32: 1>} : vector<16x16xi32>
    %c0_i32 = arith.constant 0 : i32
    %11 = vector.broadcast %c0_i32 : i32 to vector<16x16xi32>
    %12 = arith.cmpi ne, %10, %11 : vector<16x16xi32>
    %c0_3 = arith.constant 0 : index
    %c0_4 = arith.constant 0 : index
    %13 = vector.load %arg3[%c0_3, %c0_4] : memref<16x4xi32, #tpu.memory_space<vmem>>, vector<16x1xi32>
    %14 = vector.broadcast %13 : vector<16x1xi32> to vector<16x16xi32>
    %15 = arith.cmpi eq, %10, %14 : vector<16x16xi32>
    %16 = arith.andi %15, %12 : vector<16x16xi1>
    %17 = arith.extui %16 : vector<16x16xi1> to vector<16x16xi32>
    %18 = arith.sitofp %17 : vector<16x16xi32> to vector<16x16xf32>
    %c0_5 = arith.constant 0 : index
    %c1 = arith.constant 1 : index
    %19 = vector.load %arg3[%c0_5, %c1] : memref<16x4xi32, #tpu.memory_space<vmem>>, vector<16x1xi32>
    %20 = vector.broadcast %19 : vector<16x1xi32> to vector<16x16xi32>
    %21 = arith.cmpi eq, %10, %20 : vector<16x16xi32>
    %22 = arith.andi %21, %12 : vector<16x16xi1>
    %23 = arith.extui %22 : vector<16x16xi1> to vector<16x16xi32>
    %24 = arith.sitofp %23 : vector<16x16xi32> to vector<16x16xf32>
    %c0_6 = arith.constant 0 : index
    %c2 = arith.constant 2 : index
    %25 = vector.load %arg3[%c0_6, %c2] : memref<16x4xi32, #tpu.memory_space<vmem>>, vector<16x1xi32>
    %26 = vector.broadcast %25 : vector<16x1xi32> to vector<16x16xi32>
    %27 = arith.cmpi eq, %10, %26 : vector<16x16xi32>
    %28 = arith.andi %27, %12 : vector<16x16xi1>
    %29 = arith.extui %28 : vector<16x16xi1> to vector<16x16xi32>
    %30 = arith.sitofp %29 : vector<16x16xi32> to vector<16x16xf32>
    %c0_7 = arith.constant 0 : index
    %c3 = arith.constant 3 : index
    %31 = vector.load %arg3[%c0_7, %c3] : memref<16x4xi32, #tpu.memory_space<vmem>>, vector<16x1xi32>
    %32 = vector.broadcast %31 : vector<16x1xi32> to vector<16x16xi32>
    %33 = arith.cmpi eq, %10, %32 : vector<16x16xi32>
    %34 = arith.andi %33, %12 : vector<16x16xi1>
    %35 = arith.extui %34 : vector<16x16xi1> to vector<16x16xi32>
    %36 = arith.sitofp %35 : vector<16x16xi32> to vector<16x16xf32>
    %37 = tpu.concatenate %18, %24, %30, %36 in 0 : vector<16x16xf32>, vector<16x16xf32>, vector<16x16xf32>, vector<16x16xf32> -> vector<64x16xf32>
    %c0_8 = arith.constant 0 : index
    %c0_9 = arith.constant 0 : index
    %38 = vector.load %arg4[%c0_8, %c0_9] : memref<32x128xf32, #tpu.memory_space<vmem>>, vector<32x128xf32>
    %cst_10 = arith.constant dense<0.000000e+00> : vector<16x128xf32>
    %39 = tpu.matmul %9, %38, %cst_10 {dimension_numbers = #tpu.dot_dimension_numbers<[1], [0], [0], [1], [0, 0, 1, 1], [], []>} : vector<16x32xf32>, vector<32x128xf32>, vector<16x128xf32> -> vector<16x128xf32>
    %c0_11 = arith.constant 0 : index
    %c0_12 = arith.constant 0 : index
    %40 = vector.load %arg5[%c0_11, %c0_12] : memref<1x128xf32, #tpu.memory_space<vmem>>, vector<1x128xf32>
    %41 = vector.broadcast %40 : vector<1x128xf32> to vector<16x128xf32>
    %42 = arith.addf %39, %41 : vector<16x128xf32>
    %43 = vector.extract_strided_slice %42 {offsets = [0, 0], sizes = [16, 32], strides = [1, 1]} : vector<16x128xf32> to vector<16x32xf32>
    %44 = vector.extract_strided_slice %42 {offsets = [0, 32], sizes = [16, 32], strides = [1, 1]} : vector<16x128xf32> to vector<16x32xf32>
    %45 = vector.extract_strided_slice %42 {offsets = [0, 64], sizes = [16, 32], strides = [1, 1]} : vector<16x128xf32> to vector<16x32xf32>
    %c0_13 = arith.constant 0 : index
    %c0_14 = arith.constant 0 : index
    %46 = vector.load %arg6[%c0_13, %c0_14] : memref<32x32xf32, #tpu.memory_space<vmem>>, vector<32x32xf32>
    %c0_15 = arith.constant 0 : index
    %c0_16 = arith.constant 0 : index
    %47 = vector.load %arg7[%c0_15, %c0_16] : memref<32x32xf32, #tpu.memory_space<vmem>>, vector<32x32xf32>
    %c0_17 = arith.constant 0 : index
    %c0_18 = arith.constant 0 : index
    %48 = vector.load %arg8[%c0_17, %c0_18] : memref<32x32xf32, #tpu.memory_space<vmem>>, vector<32x32xf32>
    %cst_19 = arith.constant 0.000000e+00 : f32
    %49 = vector.broadcast %cst_19 : f32 to vector<16x32xf32>
    %cst_20 = arith.constant dense<0.000000e+00> : vector<64x32xf32>
    %50 = tpu.matmul %37, %49, %cst_20 {dimension_numbers = #tpu.dot_dimension_numbers<[1], [0], [0], [1], [0, 0, 1, 1], [], []>} : vector<64x16xf32>, vector<16x32xf32>, vector<64x32xf32> -> vector<64x32xf32>
    %cst_21 = arith.constant dense<0.000000e+00> : vector<64x32xf32>
    %51 = tpu.matmul %50, %48, %cst_21 {dimension_numbers = #tpu.dot_dimension_numbers<[1], [0], [0], [1], [0, 0, 1, 1], [], []>} : vector<64x32xf32>, vector<32x32xf32>, vector<64x32xf32> -> vector<64x32xf32>
    %52 = vector.shape_cast %50 : vector<64x32xf32> to vector<4x16x32xf32>
    %53 = vector.shape_cast %51 : vector<64x32xf32> to vector<4x16x32xf32>
    %cst_22 = arith.constant dense<0.000000e+00> : vector<16x32xf32>
    %54 = vector.multi_reduction <add>, %52, %cst_22 [0] : vector<4x16x32xf32> to vector<16x32xf32>
    %cst_23 = arith.constant dense<0.000000e+00> : vector<16x32xf32>
    %55 = tpu.matmul %54, %46, %cst_23 {dimension_numbers = #tpu.dot_dimension_numbers<[1], [0], [0], [1], [0, 0, 1, 1], [], []>} : vector<16x32xf32>, vector<32x32xf32>, vector<16x32xf32> -> vector<16x32xf32>
    %56 = arith.addf %44, %55 : vector<16x32xf32>
    %57 = arith.negf %56 : vector<16x32xf32>
    %58 = math.exp %57 : vector<16x32xf32>
    %cst_24 = arith.constant 1.000000e+00 : f32
    %59 = vector.broadcast %cst_24 : f32 to vector<16x32xf32>
    %60 = arith.addf %59, %58 : vector<16x32xf32>
    %61 = arith.divf %59, %60 : vector<16x32xf32>
    %62 = vector.shape_cast %43 : vector<16x32xf32> to vector<1x16x32xf32>
    %63 = vector.broadcast %62 : vector<1x16x32xf32> to vector<4x16x32xf32>
    %64 = arith.addf %63, %53 : vector<4x16x32xf32>
    %65 = arith.negf %64 : vector<4x16x32xf32>
    %66 = math.exp %65 : vector<4x16x32xf32>
    %cst_25 = arith.constant 1.000000e+00 : f32
    %67 = vector.broadcast %cst_25 : f32 to vector<4x16x32xf32>
    %68 = arith.addf %67, %66 : vector<4x16x32xf32>
    %69 = arith.divf %67, %68 : vector<4x16x32xf32>
    %70 = arith.mulf %69, %52 : vector<4x16x32xf32>
    %cst_26 = arith.constant dense<0.000000e+00> : vector<16x32xf32>
    %71 = vector.multi_reduction <add>, %70, %cst_26 [0] : vector<4x16x32xf32> to vector<16x32xf32>
    %cst_27 = arith.constant dense<0.000000e+00> : vector<16x32xf32>
    %72 = tpu.matmul %71, %47, %cst_27 {dimension_numbers = #tpu.dot_dimension_numbers<[1], [0], [0], [1], [0, 0, 1, 1], [], []>} : vector<16x32xf32>, vector<32x32xf32>, vector<16x32xf32> -> vector<16x32xf32>
    %73 = arith.addf %45, %72 : vector<16x32xf32>
    %74 = math.tanh %73 : vector<16x32xf32>
    %cst_28 = arith.constant 1.000000e+00 : f32
    %75 = vector.broadcast %cst_28 : f32 to vector<16x32xf32>
    %76 = arith.subf %75, %61 : vector<16x32xf32>
    %77 = arith.mulf %76, %54 : vector<16x32xf32>
    %78 = arith.mulf %61, %74 : vector<16x32xf32>
    %79 = arith.addf %77, %78 : vector<16x32xf32>
    %cst_29 = arith.constant dense<0.000000e+00> : vector<64x32xf32>
    %80 = tpu.matmul %37, %79, %cst_29 {dimension_numbers = #tpu.dot_dimension_numbers<[1], [0], [0], [1], [0, 0, 1, 1], [], []>} : vector<64x16xf32>, vector<16x32xf32>, vector<64x32xf32> -> vector<64x32xf32>
    %cst_30 = arith.constant dense<0.000000e+00> : vector<64x32xf32>
    %81 = tpu.matmul %80, %48, %cst_30 {dimension_numbers = #tpu.dot_dimension_numbers<[1], [0], [0], [1], [0, 0, 1, 1], [], []>} : vector<64x32xf32>, vector<32x32xf32>, vector<64x32xf32> -> vector<64x32xf32>
    %82 = vector.shape_cast %80 : vector<64x32xf32> to vector<4x16x32xf32>
    %83 = vector.shape_cast %81 : vector<64x32xf32> to vector<4x16x32xf32>
    %cst_31 = arith.constant dense<0.000000e+00> : vector<16x32xf32>
    %84 = vector.multi_reduction <add>, %82, %cst_31 [0] : vector<4x16x32xf32> to vector<16x32xf32>
    %cst_32 = arith.constant dense<0.000000e+00> : vector<16x32xf32>
    %85 = tpu.matmul %84, %46, %cst_32 {dimension_numbers = #tpu.dot_dimension_numbers<[1], [0], [0], [1], [0, 0, 1, 1], [], []>} : vector<16x32xf32>, vector<32x32xf32>, vector<16x32xf32> -> vector<16x32xf32>
    %86 = arith.addf %44, %85 : vector<16x32xf32>
    %87 = arith.negf %86 : vector<16x32xf32>
    %88 = math.exp %87 : vector<16x32xf32>
    %cst_33 = arith.constant 1.000000e+00 : f32
    %89 = vector.broadcast %cst_33 : f32 to vector<16x32xf32>
    %90 = arith.addf %89, %88 : vector<16x32xf32>
    %91 = arith.divf %89, %90 : vector<16x32xf32>
    %92 = vector.shape_cast %43 : vector<16x32xf32> to vector<1x16x32xf32>
    %93 = vector.broadcast %92 : vector<1x16x32xf32> to vector<4x16x32xf32>
    %94 = arith.addf %93, %83 : vector<4x16x32xf32>
    %95 = arith.negf %94 : vector<4x16x32xf32>
    %96 = math.exp %95 : vector<4x16x32xf32>
    %cst_34 = arith.constant 1.000000e+00 : f32
    %97 = vector.broadcast %cst_34 : f32 to vector<4x16x32xf32>
    %98 = arith.addf %97, %96 : vector<4x16x32xf32>
    %99 = arith.divf %97, %98 : vector<4x16x32xf32>
    %100 = arith.mulf %99, %82 : vector<4x16x32xf32>
    %cst_35 = arith.constant dense<0.000000e+00> : vector<16x32xf32>
    %101 = vector.multi_reduction <add>, %100, %cst_35 [0] : vector<4x16x32xf32> to vector<16x32xf32>
    %cst_36 = arith.constant dense<0.000000e+00> : vector<16x32xf32>
    %102 = tpu.matmul %101, %47, %cst_36 {dimension_numbers = #tpu.dot_dimension_numbers<[1], [0], [0], [1], [0, 0, 1, 1], [], []>} : vector<16x32xf32>, vector<32x32xf32>, vector<16x32xf32> -> vector<16x32xf32>
    %103 = arith.addf %45, %102 : vector<16x32xf32>
    %104 = math.tanh %103 : vector<16x32xf32>
    %cst_37 = arith.constant 1.000000e+00 : f32
    %105 = vector.broadcast %cst_37 : f32 to vector<16x32xf32>
    %106 = arith.subf %105, %91 : vector<16x32xf32>
    %107 = arith.mulf %106, %84 : vector<16x32xf32>
    %108 = arith.mulf %91, %104 : vector<16x32xf32>
    %109 = arith.addf %107, %108 : vector<16x32xf32>
    %cst_38 = arith.constant dense<0.000000e+00> : vector<64x32xf32>
    %110 = tpu.matmul %37, %109, %cst_38 {dimension_numbers = #tpu.dot_dimension_numbers<[1], [0], [0], [1], [0, 0, 1, 1], [], []>} : vector<64x16xf32>, vector<16x32xf32>, vector<64x32xf32> -> vector<64x32xf32>
    %cst_39 = arith.constant dense<0.000000e+00> : vector<64x32xf32>
    %111 = tpu.matmul %110, %48, %cst_39 {dimension_numbers = #tpu.dot_dimension_numbers<[1], [0], [0], [1], [0, 0, 1, 1], [], []>} : vector<64x32xf32>, vector<32x32xf32>, vector<64x32xf32> -> vector<64x32xf32>
    %112 = vector.shape_cast %110 : vector<64x32xf32> to vector<4x16x32xf32>
    %113 = vector.shape_cast %111 : vector<64x32xf32> to vector<4x16x32xf32>
    %cst_40 = arith.constant dense<0.000000e+00> : vector<16x32xf32>
    %114 = vector.multi_reduction <add>, %112, %cst_40 [0] : vector<4x16x32xf32> to vector<16x32xf32>
    %cst_41 = arith.constant dense<0.000000e+00> : vector<16x32xf32>
    %115 = tpu.matmul %114, %46, %cst_41 {dimension_numbers = #tpu.dot_dimension_numbers<[1], [0], [0], [1], [0, 0, 1, 1], [], []>} : vector<16x32xf32>, vector<32x32xf32>, vector<16x32xf32> -> vector<16x32xf32>
    %116 = arith.addf %44, %115 : vector<16x32xf32>
    %117 = arith.negf %116 : vector<16x32xf32>
    %118 = math.exp %117 : vector<16x32xf32>
    %cst_42 = arith.constant 1.000000e+00 : f32
    %119 = vector.broadcast %cst_42 : f32 to vector<16x32xf32>
    %120 = arith.addf %119, %118 : vector<16x32xf32>
    %121 = arith.divf %119, %120 : vector<16x32xf32>
    %122 = vector.shape_cast %43 : vector<16x32xf32> to vector<1x16x32xf32>
    %123 = vector.broadcast %122 : vector<1x16x32xf32> to vector<4x16x32xf32>
    %124 = arith.addf %123, %113 : vector<4x16x32xf32>
    %125 = arith.negf %124 : vector<4x16x32xf32>
    %126 = math.exp %125 : vector<4x16x32xf32>
    %cst_43 = arith.constant 1.000000e+00 : f32
    %127 = vector.broadcast %cst_43 : f32 to vector<4x16x32xf32>
    %128 = arith.addf %127, %126 : vector<4x16x32xf32>
    %129 = arith.divf %127, %128 : vector<4x16x32xf32>
    %130 = arith.mulf %129, %112 : vector<4x16x32xf32>
    %cst_44 = arith.constant dense<0.000000e+00> : vector<16x32xf32>
    %131 = vector.multi_reduction <add>, %130, %cst_44 [0] : vector<4x16x32xf32> to vector<16x32xf32>
    %cst_45 = arith.constant dense<0.000000e+00> : vector<16x32xf32>
    %132 = tpu.matmul %131, %47, %cst_45 {dimension_numbers = #tpu.dot_dimension_numbers<[1], [0], [0], [1], [0, 0, 1, 1], [], []>} : vector<16x32xf32>, vector<32x32xf32>, vector<16x32xf32> -> vector<16x32xf32>
    %133 = arith.addf %45, %132 : vector<16x32xf32>
    %134 = math.tanh %133 : vector<16x32xf32>
    %cst_46 = arith.constant 1.000000e+00 : f32
    %135 = vector.broadcast %cst_46 : f32 to vector<16x32xf32>
    %136 = arith.subf %135, %121 : vector<16x32xf32>
    %137 = arith.mulf %136, %114 : vector<16x32xf32>
    %138 = arith.mulf %121, %134 : vector<16x32xf32>
    %139 = arith.addf %137, %138 : vector<16x32xf32>
    %140 = tpu.iota {dimensions = array<i32: 0>} : vector<16x1xi32>
    %c0_i32_47 = arith.constant 0 : i32
    %141 = vector.broadcast %c0_i32_47 : i32 to vector<16x1xi32>
    %142 = arith.cmpi ne, %140, %141 : vector<16x1xi32>
    %143 = arith.extui %142 : vector<16x1xi1> to vector<16x1xi32>
    %144 = arith.sitofp %143 : vector<16x1xi32> to vector<16x1xf32>
    %145 = vector.broadcast %144 : vector<16x1xf32> to vector<16x32xf32>
    %146 = arith.mulf %139, %145 : vector<16x32xf32>
    %cst_48 = arith.constant 0.000000e+00 : f32
    %147 = vector.broadcast %cst_48 : f32 to vector<16x96xf32>
    %148 = tpu.concatenate %146, %147 in 1 : vector<16x32xf32>, vector<16x96xf32> -> vector<16x128xf32>
    %c0_49 = arith.constant 0 : index
    %c0_50 = arith.constant 0 : index
    %149 = vector.load %arg13[%c0_49, %c0_50] : memref<16x128xf32, #tpu.memory_space<vmem>>, vector<16x128xf32>
    tpu.vector_store %arg13[%c0_49, %c0_50], %148 {strides = array<i32>} : memref<16x128xf32, #tpu.memory_space<vmem>>, vector<16x128xf32>,
    %150 = tpu.iota {dimensions = array<i32: 1>} : vector<16x16xi32>
    %cst_51 = arith.constant 0.000000e+00 : f32
    %151 = vector.broadcast %cst_51 : f32 to vector<16x16xf32>
    %c0_52 = arith.constant 0 : index
    %c0_53 = arith.constant 0 : index
    %152 = vector.load %arg2[%c0_52, %c0_53] : memref<16x4xi32, #tpu.memory_space<vmem>>, vector<16x1xi32>
    %153 = vector.broadcast %152 : vector<16x1xi32> to vector<16x16xi32>
    %154 = arith.cmpi eq, %150, %153 : vector<16x16xi32>
    %155 = arith.extui %154 : vector<16x16xi1> to vector<16x16xi32>
    %156 = arith.sitofp %155 : vector<16x16xi32> to vector<16x16xf32>
    %157 = arith.addf %151, %156 : vector<16x16xf32>
    %c0_54 = arith.constant 0 : index
    %c1_55 = arith.constant 1 : index
    %158 = vector.load %arg2[%c0_54, %c1_55] : memref<16x4xi32, #tpu.memory_space<vmem>>, vector<16x1xi32>
    %159 = vector.broadcast %158 : vector<16x1xi32> to vector<16x16xi32>
    %160 = arith.cmpi eq, %150, %159 : vector<16x16xi32>
    %161 = arith.extui %160 : vector<16x16xi1> to vector<16x16xi32>
    %162 = arith.sitofp %161 : vector<16x16xi32> to vector<16x16xf32>
    %163 = arith.addf %157, %162 : vector<16x16xf32>
    %c0_56 = arith.constant 0 : index
    %c2_57 = arith.constant 2 : index
    %164 = vector.load %arg2[%c0_56, %c2_57] : memref<16x4xi32, #tpu.memory_space<vmem>>, vector<16x1xi32>
    %165 = vector.broadcast %164 : vector<16x1xi32> to vector<16x16xi32>
    %166 = arith.cmpi eq, %150, %165 : vector<16x16xi32>
    %167 = arith.extui %166 : vector<16x16xi1> to vector<16x16xi32>
    %168 = arith.sitofp %167 : vector<16x16xi32> to vector<16x16xf32>
    %169 = arith.addf %163, %168 : vector<16x16xf32>
    %c0_58 = arith.constant 0 : index
    %c3_59 = arith.constant 3 : index
    %170 = vector.load %arg2[%c0_58, %c3_59] : memref<16x4xi32, #tpu.memory_space<vmem>>, vector<16x1xi32>
    %171 = vector.broadcast %170 : vector<16x1xi32> to vector<16x16xi32>
    %172 = arith.cmpi eq, %150, %171 : vector<16x16xi32>
    %173 = arith.extui %172 : vector<16x16xi1> to vector<16x16xi32>
    %174 = arith.sitofp %173 : vector<16x16xi32> to vector<16x16xf32>
    %175 = arith.addf %169, %174 : vector<16x16xf32>
    %cst_60 = arith.constant dense<0.000000e+00> : vector<16x32xf32>
    %176 = tpu.matmul %175, %146, %cst_60 {dimension_numbers = #tpu.dot_dimension_numbers<[1], [0], [0], [1], [0, 0, 1, 1], [], []>} : vector<16x16xf32>, vector<16x32xf32>, vector<16x32xf32> -> vector<16x32xf32>
    %c0_61 = arith.constant 0 : index
    %c0_62 = arith.constant 0 : index
    %177 = vector.load %arg9[%c0_61, %c0_62] : memref<32x128xf32, #tpu.memory_space<vmem>>, vector<32x128xf32>
    %cst_63 = arith.constant dense<0.000000e+00> : vector<16x128xf32>
    %178 = tpu.matmul %8, %177, %cst_63 {dimension_numbers = #tpu.dot_dimension_numbers<[1], [0], [0], [1], [0, 0, 1, 1], [], []>} : vector<16x32xf32>, vector<32x128xf32>, vector<16x128xf32> -> vector<16x128xf32>
    %c0_64 = arith.constant 0 : index
    %c0_65 = arith.constant 0 : index
    %179 = vector.load %arg10[%c0_64, %c0_65] : memref<32x128xf32, #tpu.memory_space<vmem>>, vector<32x128xf32>
    %cst_66 = arith.constant dense<0.000000e+00> : vector<16x128xf32>
    %180 = tpu.matmul %176, %179, %cst_66 {dimension_numbers = #tpu.dot_dimension_numbers<[1], [0], [0], [1], [0, 0, 1, 1], [], []>} : vector<16x32xf32>, vector<32x128xf32>, vector<16x128xf32> -> vector<16x128xf32>
    %181 = arith.addf %178, %180 : vector<16x128xf32>
    %c0_67 = arith.constant 0 : index
    %c0_68 = arith.constant 0 : index
    %182 = vector.load %arg11[%c0_67, %c0_68] : memref<1x128xf32, #tpu.memory_space<vmem>>, vector<1x128xf32>
    %183 = vector.broadcast %182 : vector<1x128xf32> to vector<16x128xf32>
    %184 = arith.addf %181, %183 : vector<16x128xf32>
    %cst_69 = arith.constant 0.000000e+00 : f32
    %185 = vector.broadcast %cst_69 : f32 to vector<16x128xf32>
    %186 = arith.maximumf %184, %185 : vector<16x128xf32>
    %c0_70 = arith.constant 0 : index
    %c0_71 = arith.constant 0 : index
    %187 = vector.load %arg12[%c0_70, %c0_71] : memref<16x128xf32, #tpu.memory_space<vmem>>, vector<16x128xf32>
    tpu.vector_store %arg12[%c0_70, %c0_71], %186 {strides = array<i32>} : memref<16x128xf32, #tpu.memory_space<vmem>>, vector<16x128xf32>,
    return
  }
}

</mosaic_0001>

<bundles_post_ra>
// kernel: tpu_custom_call.1
= control target key start
LH: loop header
LB: loop body
LE: loop exit
PB: predicated region body
PF: predicated region fallthrough
CT: control target
= control target key end

     0   :  { %19 = vsyncpa [#allocation3], 0  ;;  %s3557_s0 = inlined_call_operand.hbm [shape: f32[20,32], index: 0, kind: input, shape index: {}]   ;;  %s3558_s1 = inlined_call_operand.vmem [shape: s32[32,1], index: 1, kind: input, shape index: {}]   ;;  %s3559_s2 = inlined_call_operand.vmem [shape: s32[16,4], index: 2, kind: input, shape index: {}]   ;;  %s3560_s3 = inlined_call_operand.vmem [shape: s32[16,4], index: 3, kind: input, shape index: {}]   ;;  %s3561_s4 = inlined_call_operand.vmem [shape: f32[32,128], index: 4, kind: input, shape index: {}]   ;;  %s3562_s5 = inlined_call_operand.vmem [shape: f32[1,128], index: 5, kind: input, shape index: {}]   ;;  %s3563_s6 = inlined_call_operand.vmem [shape: f32[32,32], index: 6, kind: input, shape index: {}]   ;;  %s3564_s7 = inlined_call_operand.hbm [shape: f32[32,32], index: 7, kind: input, shape index: {}]   ;;  %s3565_s8 = inlined_call_operand.hbm [shape: f32[32,32], index: 8, kind: input, shape index: {}]   ;;  %s3566_s9 = inlined_call_operand.hbm [shape: f32[32,128], index: 9, kind: input, shape index: {}]   ;;  %s3567_s10 = inlined_call_operand.hbm [shape: f32[32,128], index: 10, kind: input, shape index: {}]   ;;  %s3568_s11 = inlined_call_operand.vmem [shape: f32[1,128], index: 11, kind: input, shape index: {}]   ;;  %s3569_s12 = inlined_call_operand.hbm [shape: f32[16,128], index: 12, kind: output, shape index: {0}]   ;;  %s3570_s13 = inlined_call_operand.hbm [shape: f32[16,128], index: 13, kind: output, shape index: {1}]  }
   0x1   :  { %20 = vsyncpa [#allocation6], 0 }
   0x2   :  { %21 = vsyncpa [#allocation9], 0 }
   0x3   :  { %22 = vsyncpa [#allocation4], 0 }
   0x4   :  { %23 = vsyncpa [#allocation13], 0  ;;  %s53_s27 = sshll.u32 %s3564_s7, 4  ;;  %s2382_s28 = smov [#allocation5]   ;;  %s54_s27 = int_to_ptr.hbm [resolvable:$true] %s53_s27 }
   0x5   :  { %s55_s29 = sshll.u32 %s2382_s28, 4  ;;  %s79_s15 = sshll.u32 %s3566_s9, 4  ;;  %s56_s29 = int_to_ptr.vmem [resolvable:$true] %s55_s29  ;;  %s80_s15 = int_to_ptr.hbm [resolvable:$true] %s79_s15 }
   0x6   :  { %s2383_s16 = smov 128   ;;  %s2384_s17 = smov 8  }
   0x7   :  { %61 = dma.hbm_to_vmem [thread:$0]  %s54_s27, 512, %s56_s29, [#allocation6], %s2383_s16, %s2383_s16, %s2384_s17  }
   0x8   :  { %s2385_s18 = smov [#allocation8]   ;;  %s28_s7 = sshll.u32 %s3557_s0, 4  ;;  %s29_s7 = int_to_ptr.hbm [resolvable:$true] %s28_s7 }
   0x9   :  { %s81_s19 = sshll.u32 %s2385_s18, 4  ;;  %s66_s23 = sshll.u32 %s3565_s8, 4  ;;  %s82_s19 = int_to_ptr.vmem [resolvable:$true] %s81_s19  ;;  %s67_s23 = int_to_ptr.hbm [resolvable:$true] %s66_s23 }
   0xa   :  { %87 = dma.hbm_to_vmem [thread:$0]  %s80_s15, 512, %s82_s19, [#allocation9], %s2383_s16, %s2383_s16, %s2384_s17  }
   0xb   :  { %s2386_s24 = smov [#allocation2]   ;;  %s2387_s26 = smov [#allocation7]  }
   0xc   :  { %s30_s25 = sshll.u32 %s2386_s24, 4  ;;  %s68_s0 = sshll.u32 %s2387_s26, 4  ;;  %s31_s25 = int_to_ptr.vmem [resolvable:$true] %s30_s25  ;;  %s69_s0 = int_to_ptr.vmem [resolvable:$true] %s68_s0 }
   0xd   :  { %36 = dma.hbm_to_vmem [thread:$0]  %s29_s7, 384, %s31_s25, [#allocation3], %s2383_s16, %s2383_s16, %s2384_s17  }
   0xe   :  { %s92_s29 = sshll.u32 %s3567_s10, 4  ;;  %s2388_s8 = smov [#allocation10]   ;;  %s93_s29 = int_to_ptr.hbm [resolvable:$true] %s92_s29 }
   0xf   :  { %74 = dma.hbm_to_vmem [thread:$0]  %s67_s23, 512, %s69_s0, [#allocation6], %s2383_s16, %s2383_s16, %s2384_s17  }
  0x10   :  { %s94_s30 = sshll.u32 %s2388_s8, 4  ;;  %s95_s30 = int_to_ptr.vmem [resolvable:$true] %s94_s30 }
  0x11   :  { %100 = dma.hbm_to_vmem [thread:$0]  %s93_s29, 512, %s95_s30, [#allocation9], %s2383_s16, %s2383_s16, %s2384_s17  }
  0x12   :  { %2372 = dma.done.wait [#allocation3], 384  }
  0x13   :  { %2373 = vsyncadd [#allocation3], 4294966912 }
  0x14   :  { %2374 = dma.done.wait [#allocation6], 1024  }
  0x15   :  { %2375 = vsyncadd [#allocation6], 4294966272 }
  0x16   :  { %2376 = dma.done.wait [#allocation9], 1024  }
  0x17   :  { %2377 = vsyncadd [#allocation9], 4294966272  ;;  %v3574_v0 = vmov 1   ;;  %v2390_v1 = vmov 0   ;;  %v2391_v2 = vmov 2   ;;  %v203_v3 = vld [vmem:[%s3560_s3] sm:$0xff]  ;;  %v3573_v15 = vlaneseq }
  0x18   :  { %2045 = vset.pattern.permute.xlu1 %v3574_v0  ;;  %2044 = vset.pattern.permute.xlu0 %v2390_v1  ;;  %v204_v4 = vld [vmem:[%s3560_s3 + $0x8] sm:$0xff]  ;;  %v125_v5 = vld [vmem:[%s3558_s1] sm:$0xff]  ;;  %v2392_v7 = vmov 3   ;;  %v127_v8 = vld [vmem:[%s3558_s1 + $0x10] sm:$0xff]  ;;  %v3571_v10 = vmov 0.0   ;;  %vm169_vm0 = vcmask 1043456  }
  0x19   :  { %2046 = vset.pattern.permute.xlu2 %v2391_v2  ;;  %220 = vperm.xlu1 %2045, %v203_v3   ;;  %v126_v6 = vld [vmem:[%s3558_s1 + $0x8] sm:$0xff]  ;;  %v128_v9 = vld [vmem:[%s3558_s1 + $0x18] sm:$0xff]  ;;  %v155_v11 = vld [vmem:[#allocation2 + $0x10] sm:$0xf]  ;;  %v2529_v16 = vand.u32 127, %v3573_v15  ;;  %vm156_vm1 = vcmask 162816  }
  0x1a   :  { %206 = vperm.xlu0 %2044, %v203_v3   ;;  %234 = vperm.xlu2 %2046, %v203_v3   ;;  %v154_v12 = vld [vmem:[#allocation2 + $0x8] sm:$0xff]  ;;  %v153_v14 = vld [vmem:[#allocation2] sm:$0xff]  ;;  %vm311_vm5 = vcmask 130048   ;;  %v2573_v33 = vld [vmem:[#allocation7 + $0x18] sm:$0xff]  ;;  %s2396_s7 = smov 96   ;;  %s1883_s26 = sshll.u32 %s3570_s13, 4  ;;  %s1884_s26 = int_to_ptr.hbm [resolvable:$true] %s1883_s26 }
  0x1b   :  { %351 = vmatpush.msra.mxu2 %v3571_v10  ;;  %1907 = vmatpush.msk.msra.mxu0 %vm169_vm0, %v155_v11  ;;  %vm202_vm3 = vcmp.ne.s32.totalorder %v2529_v16, 0  ;;  %v2575_v34 = vld [vmem:[#allocation7 + $0x10] sm:$0xff]  ;;  %v2580_v35 = vld [vmem:[#allocation7 + $0x8] sm:$0xff]  ;;  %v2617_v43 = vld [vmem:[#allocation7] sm:$0xff]  ;;  %s2398_s13 = smov [#allocation11]   ;;  %s1870_s30 = sshll.u32 %s3569_s12, 4  ;;  %s1871_s30 = int_to_ptr.hbm [resolvable:$true] %s1870_s30 }
  0x1c   :  { %413 = vmatpush.msra.mxu3 %v2573_v33  ;;  %v264_v44 = vld [vmem:[%s3561_s4 + $0x18] sm:$0xff]  ;;  %v263_v45 = vld [vmem:[%s3561_s4 + $0x10] sm:$0xff]  ;;  %v262_v46 = vld [vmem:[%s3561_s4 + $0x8] sm:$0xff]  ;;  %s1868_s28 = sshll.u32 %s2398_s13, 4  ;;  %s1869_s28 = int_to_ptr.vmem [resolvable:$true] %s1868_s28 }
  0x1d   :  { %187 = vmatpush.msra.mxu0 %v154_v12  ;;  %288 = vmatpush.msra.mxu1 %v264_v44  ;;  %v261_v47 = vld [vmem:[%s3561_s4] sm:$0xff]  ;;  %v2647_v52 = vld [vmem:[%s3563_s6 + $0x18] sm:$0xff]  ;;  %v2652_v53 = vld [vmem:[%s3563_s6 + $0x10] sm:$0xff] }
  0x1e   :  { %414 = vmatpush.msra.mxu3 %v2575_v34  ;;  %924 = vmatpush.msrb.mxu2 %v2647_v52  ;;  %v2663_v55 = vld [vmem:[%s3563_s6 + $0x8] sm:$0xff]  ;;  %v2671_v57 = vld [vmem:[%s3563_s6] sm:$0xff]  ;;  %s2394_s6 = smov 32  }
  0x1f   :  { %188 = vmatpush.msra.mxu0 %v153_v14  ;;  %289 = vmatpush.msra.mxu1 %v263_v45 }
  0x20   :  { %415 = vmatpush.msra.mxu3 %v2580_v35  ;;  %925 = vmatpush.msrb.mxu2 %v2652_v53 }
  0x21   :  { %223 = vperm.xlu1 %2045, %v204_v4   ;;  %290 = vmatpush.msra.mxu1 %v262_v46 }
  0x22   :  { %209 = vperm.xlu0 %2044, %v204_v4   ;;  %2047 = vset.pattern.permute.xlu2 %v2390_v1 }
  0x23   :  { %130 = vperm.xlu2 %2047, %v125_v5   ;;  %416 = vmatpush.msra.mxu3 %v2617_v43 }
  0x24   :  { %291 = vmatpush.msra.mxu1 %v261_v47  ;;  %926 = vmatpush.msrb.mxu2 %v2663_v55 }
  0x26   :  { %474 = vmatpush.msrb.mxu1 %v2647_v52  ;;  %927 = vmatpush.msrb.mxu2 %v2671_v57 }
  0x28   :  { %475 = vmatpush.msrb.mxu1 %v2652_v53 }
  0x29   :  { %2049 = vset.pattern.permute.xlu1 %v2390_v1 }
  0x2a   :  { %2048 = vset.pattern.permute.xlu0 %v2391_v2  ;;  %133 = vperm.xlu1 %2049, %v126_v6  }
  0x2b   :  { %237 = vperm.xlu0 %2048, %v204_v4   ;;  %2050 = vset.pattern.permute.xlu2 %v2392_v7 }
  0x2c   :  { %248 = vperm.xlu2 %2050, %v203_v3   ;;  %476 = vmatpush.msrb.mxu1 %v2663_v55 }
  0x2e   :  { %477 = vmatpush.msrb.mxu1 %v2671_v57 }
  0x32   :  { %136 = vperm.xlu1 %2049, %v127_v8  }
  0x33   :  { %2051 = vset.pattern.permute.xlu0 %v2390_v1 }
  0x34   :  { %139 = vperm.xlu0 %2051, %v128_v9   ;;  %251 = vperm.xlu2 %2050, %v204_v4  }
  0x3c   :  { %2063 = vset.pattern.permute.xlu0 %v2391_v2  ;;  %2062 = vset.pattern.permute.xlu2 %v3574_v0 }
  0x74   :  { %v235_v13 = vpop.permute.xlu2 %234 }
  0x75   :  { %vm239_vm15 = vcmp.eq.s32.totalorder %v2529_v16, %v235_v13 }
  0x7d   :  { %v131_v17 = vpop.permute.xlu2 %130 }
  0x7e   :  { %vm141_vm2 = vcmp.eq.s32.totalorder %v2529_v16, %v131_v17 }
  0x7f   :  { %v1903_v18 = vsel %vm141_vm2, 1.0, %v3571_v10  ;;  %vm241_vm2 = vmand %vm239_vm15, %vm202_vm3 }
  0x80   :  { %1908 = vmatmul.msk.f32.vlgmr.msra.gmra.mxu0 %vm156_vm1, %v1903_v18  ;;  %v2589_v37 = vsel %vm241_vm2, 1.0, %v3571_v10 }
  0x86   :  { %v249_v38 = vpop.permute.xlu2 %248 }
  0x8b   :  { %v221_v20 = vpop.permute.xlu1 %220 }
  0x8c   :  { %v207_v19 = vpop.permute.xlu0 %206  ;;  %vm225_vm9 = vcmp.eq.s32.totalorder %v2529_v16, %v221_v20 }
  0x8d   :  { %vm211_vm4 = vcmp.eq.s32.totalorder %v2529_v16, %v207_v19  ;;  %vm227_vm10 = vmand %vm225_vm9, %vm202_vm3 }
  0x8e   :  { %vm213_vm6 = vmand %vm211_vm4, %vm202_vm3  ;;  %v2555_v26 = vsel %vm227_vm10, 1.0, %v3571_v10  ;;  %v252_v41 = vpop.permute.xlu2 %251 }
  0x8f   :  { %v2539_v21 = vsel %vm213_vm6, 1.0, %v3571_v10 }
  0x90   :  { %1922 = vmatmul.msk.f32.vlgmr.msra.gmra.mxu2 %vm311_vm5, %v2539_v21 }
  0x93   :  { %v224_v23 = vpop.permute.xlu1 %223 }
  0x94   :  { %v210_v22 = vpop.permute.xlu0 %209  ;;  %vm226_vm12 = vcmp.eq.s32.totalorder %v2529_v16, %v224_v23 }
  0x95   :  { %vm212_vm7 = vcmp.eq.s32.totalorder %v2529_v16, %v210_v22  ;;  %vm228_vm13 = vmand %vm226_vm12, %vm202_vm3 }
  0x96   :  { %vm214_vm8 = vmand %vm212_vm7, %vm202_vm3  ;;  %v2568_v31 = vsel %vm228_vm13, 1.0, %v3571_v10  ;;  %vm253_vm7 = vcmp.eq.s32.totalorder %v2529_v16, %v249_v38 }
  0x97   :  { %v2548_v24 = vsel %vm214_vm8, 1.0, %v3571_v10  ;;  %vm255_vm8 = vmand %vm253_vm7, %vm202_vm3 }
  0x98   :  { %1923 = vmatmul.msk.f32.gmra.mxu2 %vm311_vm5, %v2548_v24  ;;  %v2605_v40 = vsel %vm255_vm8, 1.0, %v3571_v10 }
  0x9c   :  { %v134_v25 = vpop.permute.xlu1 %133 }
  0x9d   :  { %v238_v27 = vpop.permute.xlu0 %237  ;;  %vm142_vm11 = vcmp.eq.s32.totalorder %v2529_v16, %v134_v25  ;;  %v2070_v25 = vld [vmem:[%s3562_s5] ss:$0 sm:$0xff]  ;;  %s2395_s5 = smov 64  }
  0x9e   :  { %v1904_v28 = vsel %vm142_vm11, 1.0, %v3571_v10  ;;  %vm240_vm4 = vcmp.eq.s32.totalorder %v2529_v16, %v238_v27 }
  0x9f   :  { %1909 = vmatmul.msk.f32.gmra.mxu0 %vm156_vm1, %v1904_v28  ;;  %vm242_vm6 = vmand %vm240_vm4, %vm202_vm3 }
  0xa0   :  { %1924 = vmatmul.msk.f32.gmra.mxu2 %vm311_vm5, %v2555_v26  ;;  %v2597_v39 = vsel %vm242_vm6, 1.0, %v3571_v10 }
  0xa4   :  { %v137_v29 = vpop.permute.xlu1 %136 }
  0xa5   :  { %vm143_vm14 = vcmp.eq.s32.totalorder %v2529_v16, %v137_v29 }
  0xa6   :  { %v1905_v30 = vsel %vm143_vm14, 1.0, %v3571_v10  ;;  %v140_v32 = vpop.permute.xlu0 %139 }
  0xa7   :  { %1910 = vmatmul.msk.f32.gmra.mxu0 %vm156_vm1, %v1905_v30  ;;  %vm144_vm0 = vcmp.eq.s32.totalorder %v2529_v16, %v140_v32 }
  0xa8   :  { %1925 = vmatmul.msk.f32.gmra.mxu2 %vm311_vm5, %v2568_v31  ;;  %v1906_v36 = vsel %vm144_vm0, 1.0, %v3571_v10 }
  0xaf   :  { %1911 = vmatmul.msk.f32.gmra.mxu0 %vm156_vm1, %v1906_v36  ;;  %vm254_vm1 = vcmp.eq.s32.totalorder %v2529_v16, %v252_v41 }
  0xb0   :  { %1926 = vmatmul.msk.f32.gmra.mxu2 %vm311_vm5, %v2589_v37  ;;  %vm256_vm9 = vmand %vm254_vm1, %vm202_vm3  ;;  %vm269_vm3 = vcmask 261120  }
  0xb1   :  { %v2613_v42 = vsel %vm256_vm9, 1.0, %v3571_v10 }
  0xb8   :  { %1927 = vmatmul.msk.f32.gmra.mxu2 %vm311_vm5, %v2597_v39 }
  0xc0   :  { %1928 = vmatmul.msk.f32.gmra.mxu2 %vm311_vm5, %v2605_v40 }
  0xc8   :  { %1929 = vmatmul.msk.f32.gmra.mxu2 %vm311_vm5, %v2613_v42 }
  0xfd   :  { %v2634_v49 = vpop.f32.mrf.mxu0 }
 0x113   :  { %v2632_v48 = vpop.f32.mrf.mxu2 }
 0x114   :  { %1930 = vmatmul.msk.f32.vlgmr.msra.gmra.mxu3 %vm269_vm3, %v2632_v48  ;;  %v442_v63 = vsel %vm269_vm3, %v2632_v48, 0.0 }
 0x11b   :  { %v2638_v50 = vpop.f32.mrf.mxu2 }
 0x11c   :  { %1931 = vmatmul.msk.f32.gmra.mxu3 %vm269_vm3, %v2638_v50  ;;  %v2642_v51 = vpop.f32.mrf.mxu0  ;;  %v449_v12 = vsel %vm269_vm3, %v2638_v50, 0.0 }
 0x123   :  { %v2658_v54 = vpop.f32.mrf.mxu2 }
 0x124   :  { %1932 = vmatmul.msk.f32.gmra.mxu3 %vm269_vm3, %v2658_v54  ;;  %v196_v56 = vpop.f32.mrf.mxu0  ;;  %v443_v62 = vsel %vm269_vm3, %v2658_v54, 0.0 }
 0x125   :  { %1920 = vmatmul.msk.f32.vlgmr.msra.gmra.mxu1 %vm269_vm3, %v196_v56  ;;  %v444_v4 = vadd.f32 %v443_v62, %v442_v63 }
 0x12b   :  { %v2677_v58 = vpop.f32.mrf.mxu2 }
 0x12c   :  { %1933 = vmatmul.msk.f32.gmra.mxu3 %vm269_vm3, %v2677_v58  ;;  %v199_v59 = vpop.f32.mrf.mxu0  ;;  %v450_v11 = vsel %vm269_vm3, %v2677_v58, 0.0 }
 0x12d   :  { %1921 = vmatmul.msk.f32.gmra.mxu1 %vm269_vm3, %v199_v59  ;;  %v451_v14 = vadd.f32 %v450_v11, %v449_v12 }
 0x133   :  { %v2682_v60 = vpop.f32.mrf.mxu2 }
 0x134   :  { %1934 = vmatmul.msk.f32.gmra.mxu3 %vm269_vm3, %v2682_v60  ;;  %v445_v3 = vsel %vm269_vm3, %v2682_v60, 0.0 }
 0x135   :  { %v446_v5 = vadd.f32 %v445_v3, %v444_v4 }
 0x13b   :  { %v2686_v61 = vpop.f32.mrf.mxu2 }
 0x13c   :  { %1935 = vmatmul.msk.f32.gmra.mxu3 %vm269_vm3, %v2686_v61  ;;  %v452_v13 = vsel %vm269_vm3, %v2686_v61, 0.0 }
 0x13d   :  { %v453_v17 = vadd.f32 %v452_v13, %v451_v14 }
 0x143   :  { %v2696_v6 = vpop.f32.mrf.mxu2 }
 0x144   :  { %v447_v8 = vsel %vm269_vm3, %v2696_v6, 0.0  ;;  %1936 = vmatmul.msk.f32.gmra.mxu3 %vm269_vm3, %v2696_v6 }
 0x145   :  { %v2702_v9 = vadd.f32 %v447_v8, %v446_v5 }
 0x147   :  { %1938 = vmatmul.msk.f32.vlgmr.msrb.gmra.mxu1 %vm269_vm3, %v2702_v9 }
 0x14b   :  { %v2712_v18 = vpop.f32.mrf.mxu2 }
 0x14c   :  { %v454_v19 = vsel %vm269_vm3, %v2712_v18, 0.0  ;;  %1937 = vmatmul.msk.f32.gmra.mxu3 %vm269_vm3, %v2712_v18 }
 0x14d   :  { %v455_v20 = vadd.f32 %v454_v19, %v453_v17 }
 0x14f   :  { %760 = vrot.lane.b32.xlu0 %v455_v20, %s2394_s6  ;;  %1939 = vmatmul.msk.f32.gmra.mxu1 %vm269_vm3, %v455_v20 }
 0x197   :  { %v418_v22 = vpop.f32.mrf.mxu3 }
 0x19f   :  { %v421_v23 = vpop.f32.mrf.mxu3 }
 0x1a2   :  { %v293_v27 = vpop.f32.mrf.mxu1 }
 0x1a3   :  { %v2723_v28 = vadd.f32 %v2070_v25, %v293_v27 }
 0x1a5   :  { %v533_v29 = vadd.f32 %v418_v22, %v2723_v28 }
 0x1a7   :  { %v424_v30 = vpop.f32.mrf.mxu3  ;;  %v1942_v36 = vmul.f32 -1.442695, %v533_v29 }
 0x1a8   :  { %v535_v32 = vadd.f32 %v424_v30, %v2723_v28  ;;  %v2751_v30 = vld [vmem:[#allocation5 + $0x18] sm:$0xff] }
 0x1a9   :  { %2072 = vpow2.f32 %v1942_v36  ;;  %733 = vmatpush.msrb.mxu0 %v2751_v30  ;;  %1183 = vmatpush.msrb.mxu3 %v2751_v30  ;;  %v2758_v36 = vld [vmem:[#allocation5 + $0x10] sm:$0xff] }
 0x1aa   :  { %v1944_v38 = vmul.f32 -1.442695, %v535_v32  ;;  %v296_v41 = vpop.f32.mrf.mxu1 }
 0x1ab   :  { %v2727_v44 = vadd.f32 %v2070_v25, %v296_v41  ;;  %734 = vmatpush.msrb.mxu0 %v2758_v36  ;;  %v2763_v41 = vld [vmem:[#allocation5 + $0x8] sm:$0xff]  ;;  %1184 = vmatpush.msrb.mxu3 %v2758_v36 }
 0x1ac   :  { %2074 = vpow2.f32 %v1944_v38 }
 0x1ad   :  { %v534_v45 = vadd.f32 %v421_v23, %v2727_v44  ;;  %735 = vmatpush.msrb.mxu0 %v2763_v41  ;;  %1185 = vmatpush.msrb.mxu3 %v2763_v41 }
 0x1af   :  { %v427_v46 = vpop.f32.mrf.mxu3  ;;  %v1943_v56 = vmul.f32 -1.442695, %v534_v45  ;;  %v2073_v62 = vpop.eup %2072 }
 0x1b0   :  { %v536_v47 = vadd.f32 %v427_v46, %v2727_v44  ;;  %v2731_v3 = vadd.f32 1.0, %v2073_v62  ;;  %v2766_v46 = vld [vmem:[#allocation5] sm:$0xff] }
 0x1b1   :  { %2076 = vpow2.f32 %v1943_v56  ;;  %736 = vmatpush.msrb.mxu0 %v2766_v46  ;;  %1186 = vmatpush.msrb.mxu3 %v2766_v46 }
 0x1b2   :  { %v1945_v59 = vmul.f32 -1.442695, %v536_v47  ;;  %v2075_v63 = vpop.eup %2074  ;;  %vm578_vm12 = vweird.f32 %v2731_v3 }
 0x1b3   :  { %v2733_v4 = vadd.f32 1.0, %v2075_v63  ;;  %863 = vmatpush.msra.mxu0 %v2573_v33  ;;  %1313 = vmatpush.msra.mxu3 %v2573_v33 }
 0x1b4   :  { %2078 = vpow2.f32 %v1945_v59 }
 0x1b5   :  { %2080 = vrcp.f32 %v2731_v3  ;;  %864 = vmatpush.msra.mxu0 %v2575_v34  ;;  %1314 = vmatpush.msra.mxu3 %v2575_v34  ;;  %vm608_vm13 = vweird.f32 %v2733_v4 }
 0x1b6   :  { %2082 = vrcp.f32 %v2733_v4 }
 0x1b7   :  { %v430_v5 = vpop.f32.mrf.mxu3  ;;  %v2077_v12 = vpop.eup %2076  ;;  %865 = vmatpush.msra.mxu0 %v2580_v35  ;;  %1315 = vmatpush.msra.mxu3 %v2580_v35 }
 0x1b8   :  { %v537_v8 = vadd.f32 %v430_v5, %v2723_v28  ;;  %v2738_v14 = vadd.f32 1.0, %v2077_v12 }
 0x1b9   :  { %866 = vmatpush.msra.mxu0 %v2617_v43  ;;  %1316 = vmatpush.msra.mxu3 %v2617_v43 }
 0x1ba   :  { %v1946_v11 = vmul.f32 -1.442695, %v537_v8  ;;  %v2079_v13 = vpop.eup %2078  ;;  %vm593_vm7 = vweird.f32 %v2738_v14 }
 0x1bb   :  { %v2740_v17 = vadd.f32 1.0, %v2079_v13  ;;  %v2742_v20 = vpop.eup %2080 }
 0x1bc   :  { %2084 = vpow2.f32 %v1946_v11  ;;  %v2745_v23 = vpop.eup %2082  ;;  %v574_v38 = vmul.f32 %v2742_v20, %v2731_v3  ;;  %vm579_vm10 = vweird.f32 %v2742_v20 }
 0x1bd   :  { %2086 = vrcp.f32 %v2738_v14  ;;  %v604_v32 = vmul.f32 %v2745_v23, %v2733_v4  ;;  %vm609_vm11 = vweird.f32 %v2745_v23  ;;  %vm2816_vm14 = vmor %vm578_vm12, %vm579_vm10  ;;  %vm623_vm6 = vweird.f32 %v2740_v17 }
 0x1be   :  { %2088 = vrcp.f32 %v2740_v17  ;;  %v575_v63 = vsub.f32 1.0, %v574_v38  ;;  %v582_v38 = vand.u32 2147483647, %v2731_v3  ;;  %vm2826_vm0 = vmor %vm608_vm13, %vm609_vm11 }
 0x1bf   :  { %v433_v19 = vpop.f32.mrf.mxu3  ;;  %v605_v62 = vsub.f32 1.0, %v604_v32 }
 0x1c0   :  { %v538_v22 = vadd.f32 %v433_v19, %v2727_v44  ;;  %vm2820_vm15 = vcmp.eq.f32.partialorder %v582_v38, 8.507059e+37 }
 0x1c1   :  { %v606_v19 = vmul.f32 %v2745_v23, %v605_v62  ;;  %v614_v62 = vand.u32 2147483648, %v2733_v4 }
 0x1c2   :  { %v2085_v25 = vpop.eup %2084  ;;  %v1947_v27 = vmul.f32 -1.442695, %v538_v22  ;;  %v576_v22 = vmul.f32 %v2742_v20, %v575_v63 }
 0x1c3   :  { %v2749_v29 = vadd.f32 1.0, %v2085_v25  ;;  %v2768_v47 = vpop.eup %2086  ;;  %v607_v34 = vadd.f32 %v2745_v23, %v606_v19 }
 0x1c4   :  { %2090 = vpow2.f32 %v1947_v27  ;;  %v2773_v59 = vpop.eup %2088  ;;  %v589_v25 = vmul.f32 %v2768_v47, %v2738_v14  ;;  %vm594_vm9 = vweird.f32 %v2768_v47 }
 0x1c5   :  { %2092 = vrcp.f32 %v2749_v29  ;;  %v619_v33 = vmul.f32 %v2773_v59, %v2740_v17  ;;  %vm638_vm8 = vweird.f32 %v2749_v29  ;;  %vm624_vm10 = vweird.f32 %v2773_v59  ;;  %vm2882_vm13 = vmor %vm593_vm7, %vm594_vm9 }
 0x1c7   :  { %v436_v45 = vpop.f32.mrf.mxu3 }
 0x1c8   :  { %v539_v56 = vadd.f32 %v436_v45, %v2723_v28  ;;  %v584_v45 = vand.u32 2147483648, %v2731_v3 }
 0x1ca   :  { %v2091_v5 = vpop.eup %2090  ;;  %v1948_v8 = vmul.f32 -1.442695, %v539_v56  ;;  %v612_v56 = vand.u32 2147483647, %v2733_v4 }
 0x1cb   :  { %v2777_v11 = vpop.eup %2092  ;;  %v2779_v12 = vadd.f32 1.0, %v2091_v5  ;;  %v577_v5 = vadd.f32 %v2742_v20, %v576_v22 }
 0x1cc   :  { %v634_v13 = vmul.f32 %v2777_v11, %v2749_v29  ;;  %2094 = vpow2.f32 %v1948_v8  ;;  %v590_v8 = vsub.f32 1.0, %v589_v25  ;;  %v585_v25 = vor.u32 1.1754944e-38, %v584_v45 }
 0x1cd   :  { %2096 = vrcp.f32 %v2779_v12  ;;  %vm2830_vm2 = vcmp.eq.f32.partialorder %v612_v56, 8.507059e+37  ;;  %v581_v38 = vsel %vm2816_vm14, %v2742_v20, %v577_v5  ;;  %v611_v45 = vsel %vm2826_vm0, %v2745_v23, %v607_v34  ;;  %vm2895_vm14 = vmor %vm623_vm6, %vm624_vm10 }
 0x1ce   :  { %v635_v27 = vsub.f32 1.0, %v634_v13  ;;  %v620_v13 = vsub.f32 1.0, %v619_v33  ;;  %v615_v33 = vor.u32 1.1754944e-38, %v614_v62  ;;  %v591_v56 = vmul.f32 %v2768_v47, %v590_v8 }
 0x1cf   :  { %v439_v32 = vpop.f32.mrf.mxu3  ;;  %vm639_vm4 = vweird.f32 %v2777_v11  ;;  %v597_v20 = vand.u32 2147483647, %v2738_v14  ;;  %v629_v5 = vand.u32 2147483648, %v2740_v17  ;;  %v642_v23 = vand.u32 2147483647, %v2749_v29 }
 0x1d0   :  { %v540_v63 = vadd.f32 %v439_v32, %v2727_v44  ;;  %v636_v10 = vmul.f32 %v2777_v11, %v635_v27  ;;  %v599_v34 = vand.u32 2147483648, %v2738_v14  ;;  %vm2855_vm1 = vmor %vm638_vm8, %vm639_vm4  ;;  %v592_v22 = vadd.f32 %v2768_v47, %v591_v56 }
 0x1d1   :  { %vm2873_vm11 = vcmp.eq.f32.partialorder %v597_v20, 8.507059e+37  ;;  %vm643_vm12 = vcmp.eq.f32.partialorder %v642_v23, 8.507059e+37  ;;  %vm653_vm0 = vweird.f32 %v2779_v12 }
 0x1d2   :  { %v2095_v35 = vpop.eup %2094  ;;  %v1949_v15 = vmul.f32 -1.442695, %v540_v63  ;;  %v621_v63 = vmul.f32 %v2773_v59, %v620_v13  ;;  %v616_v13 = vsel %vm2830_vm2, %v615_v33, %v611_v45  ;;  %v627_v33 = vand.u32 2147483647, %v2740_v17 }
 0x1d3   :  { %v2809_v32 = vpop.eup %2096  ;;  %v2812_v19 = vadd.f32 1.0, %v2095_v35  ;;  %v637_v35 = vadd.f32 %v2777_v11, %v636_v10  ;;  %v586_v10 = vsel %vm2820_vm15, %v585_v25, %v581_v38  ;;  %v659_v17 = vand.u32 2147483648, %v2779_v12 }
 0x1d4   :  { %v649_v27 = vmul.f32 %v2809_v32, %v2779_v12  ;;  %2098 = vpow2.f32 %v1949_v15  ;;  %v644_v15 = vand.u32 2147483648, %v2749_v29  ;;  %v622_v0 = vadd.f32 %v2773_v59, %v621_v63 }
 0x1d5   :  { %2100 = vrcp.f32 %v2812_v19  ;;  %v641_v29 = vsel %vm2855_vm1, %v2777_v11, %v637_v35  ;;  %v693_v56 = vmul.f32 %v586_v10, %v2632_v48  ;;  %v600_v63 = vor.u32 1.1754944e-38, %v599_v34 }
 0x1d6   :  { %v650_v62 = vsub.f32 1.0, %v649_v27  ;;  %v645_v25 = vor.u32 1.1754944e-38, %v644_v15  ;;  %v695_v35 = vmul.f32 %v616_v13, %v2658_v54  ;;  %v596_v15 = vsel %vm2882_vm13, %v2768_v47, %v592_v22 }
 0x1d7   :  { %v626_v20 = vsel %vm2895_vm14, %v2773_v59, %v622_v0  ;;  %vm654_vm15 = vweird.f32 %v2809_v32  ;;  %v674_v54 = vand.u32 2147483648, %v2812_v19  ;;  %v657_v47 = vand.u32 2147483647, %v2779_v12 }
 0x1d8   :  { %v651_v27 = vmul.f32 %v2809_v32, %v650_v62  ;;  %v646_v62 = vsel %vm643_vm12, %v645_v25, %v641_v29  ;;  %v672_v8 = vand.u32 2147483647, %v2812_v19  ;;  %v630_v13 = vor.u32 1.1754944e-38, %v629_v5  ;;  %vm2912_vm6 = vmor %vm653_vm0, %vm654_vm15 }
 0x1d9   :  { %v697_v10 = vmul.f32 %v646_v62, %v2682_v60  ;;  %v701_v0 = vsel %vm269_vm3, %v693_v56, 0.0  ;;  %v702_v59 = vsel %vm269_vm3, %v695_v35, 0.0  ;;  %vm628_vm4 = vcmp.eq.f32.partialorder %v627_v33, 8.507059e+37 }
 0x1da   :  { %v2099_v3 = vpop.eup %2098  ;;  %v652_v23 = vadd.f32 %v2809_v32, %v651_v27  ;;  %vm668_vm7 = vweird.f32 %v2812_v19  ;;  %v601_v12 = vsel %vm2873_vm11, %v600_v63, %v596_v15  ;;  %v675_v27 = vor.u32 1.1754944e-38, %v674_v54 }
 0x1db   :  { %v2101_v43 = vpop.eup %2100  ;;  %v2871_v38 = vadd.f32 1.0, %v2099_v3  ;;  %v631_v29 = vsel %vm628_vm4, %v630_v13, %v626_v20  ;;  %vm658_vm1 = vcmp.eq.f32.partialorder %v657_v47, 8.507059e+37  ;;  %v660_v25 = vor.u32 1.1754944e-38, %v659_v17 }
 0x1dc   :  { %v664_v45 = vmul.f32 %v2101_v43, %v2812_v19  ;;  %vm669_vm2 = vweird.f32 %v2101_v43  ;;  %v656_v60 = vsel %vm2912_vm6, %v2809_v32, %v652_v23  ;;  %vm673_vm9 = vcmp.eq.f32.partialorder %v672_v8, 8.507059e+37 }
 0x1dd   :  { %2102 = vrcp.f32 %v2871_v38  ;;  %vm670_vm8 = vmor %vm668_vm7, %vm669_vm2  ;;  %v704_v19 = vsel %vm269_vm3, %v697_v10, 0.0  ;;  %v703_v11 = vadd.f32 %v702_v59, %v701_v0  ;;  %v661_v4 = vsel %vm658_vm1, %v660_v25, %v656_v60 }
 0x1de   :  { %v665_v14 = vsub.f32 1.0, %v664_v45  ;;  %v696_v32 = vmul.f32 %v631_v29, %v2677_v58  ;;  %v687_v15 = vand.u32 2147483647, %v2871_v38  ;;  %v689_v48 = vand.u32 2147483648, %v2871_v38 }
 0x1df   :  { %v705_v35 = vadd.f32 %v704_v19, %v703_v11  ;;  %v698_v23 = vmul.f32 %v661_v4, %v2686_v61  ;;  %vm683_vm11 = vweird.f32 %v2871_v38 }
 0x1e0   :  { %v666_v34 = vmul.f32 %v2101_v43, %v665_v14  ;;  %v694_v14 = vmul.f32 %v601_v12, %v2638_v50  ;;  %v690_v58 = vor.u32 1.1754944e-38, %v689_v48  ;;  %vm688_vm13 = vcmp.eq.f32.partialorder %v687_v15, 8.507059e+37 }
 0x1e2   :  { %v667_v3 = vadd.f32 %v2101_v43, %v666_v34  ;;  %v708_v50 = vsel %vm269_vm3, %v694_v14, 0.0  ;;  %v711_v34 = vsel %vm269_vm3, %v698_v23, 0.0  ;;  %v761_v23 = vpop.permute.xlu0 %760 }
 0x1e3   :  { %v2103_v5 = vpop.eup %2102 }
 0x1e4   :  { %v679_v33 = vmul.f32 %v2103_v5, %v2871_v38  ;;  %v671_v45 = vsel %vm670_vm8, %v2101_v43, %v667_v3  ;;  %vm684_vm10 = vweird.f32 %v2103_v5 }
 0x1e5   :  { %v676_v56 = vsel %vm673_vm9, %v675_v27, %v671_v45  ;;  %vm685_vm12 = vmor %vm683_vm11, %vm684_vm10 }
 0x1e6   :  { %v680_v63 = vsub.f32 1.0, %v679_v33  ;;  %v699_v62 = vmul.f32 %v676_v56, %v2696_v6  ;;  %v709_v6 = vsel %vm269_vm3, %v696_v32, 0.0 }
 0x1e7   :  { %v710_v61 = vadd.f32 %v709_v6, %v708_v50 }
 0x1e8   :  { %v706_v43 = vsel %vm269_vm3, %v699_v62, 0.0  ;;  %v681_v20 = vmul.f32 %v2103_v5, %v680_v63 }
 0x1e9   :  { %v707_v54 = vadd.f32 %v706_v43, %v705_v35  ;;  %v712_v38 = vadd.f32 %v711_v34, %v710_v61 }
 0x1ea   :  { %v682_v47 = vadd.f32 %v2103_v5, %v681_v20 }
 0x1eb   :  { %1950 = vmatmul.msk.f32.vlgmr.msrb.gmra.mxu0 %vm269_vm3, %v707_v54 }
 0x1ec   :  { %v686_v17 = vsel %vm685_vm12, %v2103_v5, %v682_v47  ;;  %1633 = vmatpush.msrb.mxu0 %v2751_v30  ;;  %v479_v30 = vpop.f32.mrf.mxu1 }
 0x1ed   :  { %v691_v8 = vsel %vm688_vm13, %v690_v58, %v686_v17 }
 0x1ee   :  { %v700_v10 = vmul.f32 %v691_v8, %v2712_v18  ;;  %1634 = vmatpush.msrb.mxu0 %v2758_v36 }
 0x1f0   :  { %v713_v13 = vsel %vm269_vm3, %v700_v10, 0.0  ;;  %1635 = vmatpush.msrb.mxu0 %v2763_v41 }
 0x1f1   :  { %v714_v0 = vadd.f32 %v713_v13, %v712_v38 }
 0x1f2   :  { %1636 = vmatpush.msrb.mxu0 %v2766_v46 }
 0x1f3   :  { %1951 = vmatmul.msk.f32.gmra.mxu0 %vm269_vm3, %v714_v0 }
 0x1f4   :  { %v482_v18 = vpop.f32.mrf.mxu1 }
 0x268   :  { %v738_v59 = vpop.f32.mrf.mxu0 }
 0x269   :  { %746 = vrot.lane.b32.xlu2 %v738_v59, %s2395_s5 }
 0x270   :  { %v741_v22 = vpop.f32.mrf.mxu0 }
 0x271   :  { %487 = vrot.lane.b32.xlu2 %v479_v30, %s2394_s6  ;;  %748 = vrot.lane.b32.xlu1 %v741_v22, %s2395_s5 }
 0x279   :  { %758 = vrot.lane.b32.xlu2 %v2702_v9, %s2394_s6  ;;  %489 = vrot.lane.b32.xlu1 %v482_v18, %s2394_s6 }
 0x2c3   :  { %v747_v36 = vpop.permute.xlu2 %746 }
 0x2c4   :  { %v752_v41 = vadd.f32 %v747_v36, %v2723_v28 }
 0x2c6   :  { %2104 = vtanh.f32 %v752_v41 }
 0x2cb   :  { %v488_v5 = vpop.permute.xlu2 %487 }
 0x2cc   :  { %v2105_v46 = vpop.eup %2104  ;;  %v493_v9 = vadd.f32 %v488_v5, %v2723_v28 }
 0x2cd   :  { %768 = vrot.lane.b32.xlu0 %v2105_v46, %s2396_s7 }
 0x2ce   :  { %v1940_v25 = vmul.f32 -1.442695, %v493_v9 }
 0x2d3   :  { %v759_v30 = vpop.permute.xlu2 %758 }
 0x2e3   :  { %v749_v3 = vpop.permute.xlu1 %748 }
 0x2e4   :  { %v753_v12 = vadd.f32 %v749_v3, %v2727_v44 }
 0x2e6   :  { %2106 = vtanh.f32 %v753_v12 }
 0x2e7   :  { %2108 = vpow2.f32 %v1940_v25 }
 0x2eb   :  { %v490_v27 = vpop.permute.xlu1 %489 }
 0x2ec   :  { %v2107_v60 = vpop.eup %2106  ;;  %v494_v29 = vadd.f32 %v490_v27, %v2727_v44 }
 0x2ed   :  { %770 = vrot.lane.b32.xlu1 %v2107_v60, %s2396_s7  ;;  %v2109_v45 = vpop.eup %2108 }
 0x2ee   :  { %v1941_v33 = vmul.f32 -1.442695, %v494_v29  ;;  %v501_v56 = vadd.f32 1.0, %v2109_v45 }
 0x2f0   :  { %2110 = vpow2.f32 %v1941_v33  ;;  %vm508_vm0 = vweird.f32 %v501_v56  ;;  %v514_v54 = vand.u32 2147483648, %v501_v56  ;;  %v512_v6 = vand.u32 2147483647, %v501_v56 }
 0x2f1   :  { %2112 = vrcp.f32 %v501_v56 }
 0x2f2   :  { %v515_v34 = vor.u32 1.1754944e-38, %v514_v54  ;;  %vm513_vm7 = vcmp.eq.f32.partialorder %v512_v6, 8.507059e+37 }
 0x2f6   :  { %v2111_v19 = vpop.eup %2110 }
 0x2f7   :  { %v502_v11 = vadd.f32 1.0, %v2111_v19  ;;  %v2113_v4 = vpop.eup %2112 }
 0x2f8   :  { %v504_v62 = vmul.f32 %v2113_v4, %v501_v56  ;;  %vm509_vm14 = vweird.f32 %v2113_v4 }
 0x2f9   :  { %2114 = vrcp.f32 %v502_v11  ;;  %v529_v47 = vand.u32 2147483648, %v502_v11  ;;  %vm510_vm2 = vmor %vm508_vm0, %vm509_vm14  ;;  %vm523_vm4 = vweird.f32 %v502_v11  ;;  %v527_v58 = vand.u32 2147483647, %v502_v11 }
 0x2fa   :  { %v505_v35 = vsub.f32 1.0, %v504_v62 }
 0x2fb   :  { %v530_v8 = vor.u32 1.1754944e-38, %v529_v47  ;;  %vm528_vm8 = vcmp.eq.f32.partialorder %v527_v58, 8.507059e+37 }
 0x2fc   :  { %v506_v48 = vmul.f32 %v2113_v4, %v505_v35 }
 0x2fe   :  { %v507_v43 = vadd.f32 %v2113_v4, %v506_v48 }
 0x2ff   :  { %v2115_v63 = vpop.eup %2114 }
 0x300   :  { %v519_v32 = vmul.f32 %v2115_v63, %v502_v11  ;;  %vm524_vm15 = vweird.f32 %v2115_v63  ;;  %v511_v17 = vsel %vm510_vm2, %v2113_v4, %v507_v43 }
 0x301   :  { %vm525_vm6 = vmor %vm523_vm4, %vm524_vm15  ;;  %v516_v61 = vsel %vm513_vm7, %v515_v34, %v511_v17 }
 0x302   :  { %v520_v15 = vsub.f32 1.0, %v519_v32  ;;  %v756_v13 = vsub.f32 1.0, %v516_v61 }
 0x304   :  { %v521_v14 = vmul.f32 %v2115_v63, %v520_v15  ;;  %v764_v18 = vmul.f32 %v759_v30, %v756_v13 }
 0x306   :  { %v522_v20 = vadd.f32 %v2115_v63, %v521_v14 }
 0x308   :  { %v526_v50 = vsel %vm525_vm6, %v2115_v63, %v522_v20 }
 0x309   :  { %v531_v10 = vsel %vm528_vm8, %v530_v8, %v526_v50 }
 0x30a   :  { %v757_v0 = vsub.f32 1.0, %v531_v10 }
 0x30c   :  { %v765_v36 = vmul.f32 %v761_v23, %v757_v0 }
 0x33f   :  { %v769_v38 = vpop.permute.xlu0 %768 }
 0x340   :  { %v774_v59 = vmul.f32 %v769_v38, %v516_v61 }
 0x342   :  { %v776_v46 = vadd.f32 %v774_v59, %v764_v18 }
 0x35f   :  { %v771_v22 = vpop.permute.xlu1 %770 }
 0x360   :  { %v775_v41 = vmul.f32 %v771_v22, %v531_v10 }
 0x362   :  { %v777_v3 = vadd.f32 %v775_v41, %v765_v36 }
 0x364   :  { %v2052_v12 = vpack.i.bf16 %v776_v46, %v777_v3 }
 0x366   :  { %2053 = vrot.lane.b32.xlu1 %v2052_v12, %s2396_s7 }
 0x3d8   :  { %v2054_v60 = vpop.permute.xlu1 %2053 }
 0x3d9   :  { %v2055_v5 = vunpack.i.l.bf16 %v2054_v60  ;;  %v2056_v27 = vunpack.i.h.bf16 %v2054_v60 }
 0x3db   :  { %800 = vmatpush.msra.mxu1 %v2055_v5 }
 0x3dd   :  { %801 = vmatpush.msra.mxu1 %v2056_v27 }
 0x3de   :  { %1952 = vmatmul.msk.f32.vlgmr.msra.gmra.mxu1 %vm311_vm5, %v2539_v21 }
 0x3df   :  { %1374 = vmatpush.msrb.mxu1 %v2647_v52 }
 0x3e1   :  { %1375 = vmatpush.msrb.mxu1 %v2652_v53 }
 0x3e3   :  { %1376 = vmatpush.msrb.mxu1 %v2663_v55 }
 0x3e5   :  { %1377 = vmatpush.msrb.mxu1 %v2671_v57 }
 0x3e6   :  { %1953 = vmatmul.msk.f32.gmra.mxu1 %vm311_vm5, %v2548_v24 }
 0x3ee   :  { %1954 = vmatmul.msk.f32.gmra.mxu1 %vm311_vm5, %v2555_v26 }
 0x3f6   :  { %1955 = vmatmul.msk.f32.gmra.mxu1 %vm311_vm5, %v2568_v31 }
 0x3fe   :  { %1956 = vmatmul.msk.f32.gmra.mxu1 %vm311_vm5, %v2589_v37 }
 0x406   :  { %1957 = vmatmul.msk.f32.gmra.mxu1 %vm311_vm5, %v2597_v39 }
 0x40e   :  { %1958 = vmatmul.msk.f32.gmra.mxu1 %vm311_vm5, %v2605_v40 }
 0x416   :  { %1959 = vmatmul.msk.f32.gmra.mxu1 %vm311_vm5, %v2613_v42 }
 0x45b   :  { %v2976_v52 = vpop.f32.mrf.mxu1 }
 0x45c   :  { %1960 = vmatmul.msk.f32.vlgmr.msra.gmra.mxu0 %vm269_vm3, %v2976_v52  ;;  %v892_v33 = vsel %vm269_vm3, %v2976_v52, 0.0 }
 0x463   :  { %v2980_v53 = vpop.f32.mrf.mxu1 }
 0x464   :  { %1961 = vmatmul.msk.f32.gmra.mxu0 %vm269_vm3, %v2980_v53  ;;  %v899_v32 = vsel %vm269_vm3, %v2980_v53, 0.0 }
 0x46b   :  { %v2984_v55 = vpop.f32.mrf.mxu1 }
 0x46c   :  { %1962 = vmatmul.msk.f32.gmra.mxu0 %vm269_vm3, %v2984_v55  ;;  %v893_v25 = vsel %vm269_vm3, %v2984_v55, 0.0 }
 0x46d   :  { %v894_v19 = vadd.f32 %v893_v25, %v892_v33 }
 0x473   :  { %v2988_v57 = vpop.f32.mrf.mxu1 }
 0x474   :  { %1963 = vmatmul.msk.f32.gmra.mxu0 %vm269_vm3, %v2988_v57  ;;  %v900_v62 = vsel %vm269_vm3, %v2988_v57, 0.0 }
 0x475   :  { %v901_v15 = vadd.f32 %v900_v62, %v899_v32 }
 0x47b   :  { %v2992_v9 = vpop.f32.mrf.mxu1 }
 0x47c   :  { %1964 = vmatmul.msk.f32.gmra.mxu0 %vm269_vm3, %v2992_v9  ;;  %v895_v45 = vsel %vm269_vm3, %v2992_v9, 0.0 }
 0x47d   :  { %v896_v56 = vadd.f32 %v895_v45, %v894_v19 }
 0x483   :  { %v2996_v29 = vpop.f32.mrf.mxu1 }
 0x484   :  { %1965 = vmatmul.msk.f32.gmra.mxu0 %vm269_vm3, %v2996_v29  ;;  %v902_v35 = vsel %vm269_vm3, %v2996_v29, 0.0 }
 0x485   :  { %v903_v48 = vadd.f32 %v902_v35, %v901_v15 }
 0x48b   :  { %v3006_v11 = vpop.f32.mrf.mxu1 }
 0x48c   :  { %v897_v4 = vsel %vm269_vm3, %v3006_v11, 0.0  ;;  %1966 = vmatmul.msk.f32.gmra.mxu0 %vm269_vm3, %v3006_v11 }
 0x48d   :  { %v3012_v63 = vadd.f32 %v897_v4, %v896_v56 }
 0x48f   :  { %1968 = vmatmul.msk.f32.vlgmr.msrb.gmra.mxu2 %vm269_vm3, %v3012_v63 }
 0x493   :  { %v3022_v14 = vpop.f32.mrf.mxu1 }
 0x494   :  { %v904_v43 = vsel %vm269_vm3, %v3022_v14, 0.0  ;;  %1967 = vmatmul.msk.f32.gmra.mxu0 %vm269_vm3, %v3022_v14 }
 0x495   :  { %v3028_v20 = vadd.f32 %v904_v43, %v903_v48 }
 0x497   :  { %1969 = vmatmul.msk.f32.gmra.mxu2 %vm269_vm3, %v3028_v20 }
 0x4d9   :  { %v868_v23 = vpop.f32.mrf.mxu0 }
 0x4da   :  { %v983_v47 = vadd.f32 %v868_v23, %v2723_v28 }
 0x4dc   :  { %v1972_v17 = vmul.f32 -1.442695, %v983_v47 }
 0x4de   :  { %2116 = vpow2.f32 %v1972_v17 }
 0x4e1   :  { %v871_v54 = vpop.f32.mrf.mxu0 }
 0x4e2   :  { %v984_v50 = vadd.f32 %v871_v54, %v2727_v44 }
 0x4e4   :  { %v1973_v10 = vmul.f32 -1.442695, %v984_v50  ;;  %v2117_v13 = vpop.eup %2116 }
 0x4e5   :  { %v3036_v59 = vadd.f32 1.0, %v2117_v13 }
 0x4e7   :  { %v1032_v17 = vand.u32 2147483647, %v3036_v59  ;;  %vm1028_vm1 = vweird.f32 %v3036_v59 }
 0x4e9   :  { %v874_v6 = vpop.f32.mrf.mxu0  ;;  %vm3082_vm9 = vcmp.eq.f32.partialorder %v1032_v17, 8.507059e+37 }
 0x4ea   :  { %v985_v58 = vadd.f32 %v874_v6, %v2723_v28 }
 0x4ec   :  { %v1974_v34 = vmul.f32 -1.442695, %v985_v58 }
 0x4ee   :  { %2118 = vpow2.f32 %v1974_v34 }
 0x4ef   :  { %2120 = vpow2.f32 %v1973_v10 }
 0x4f1   :  { %v877_v8 = vpop.f32.mrf.mxu0 }
 0x4f2   :  { %v986_v61 = vadd.f32 %v877_v8, %v2727_v44  ;;  %v1034_v8 = vand.u32 2147483648, %v3036_v59 }
 0x4f4   :  { %v1975_v38 = vmul.f32 -1.442695, %v986_v61  ;;  %v2119_v0 = vpop.eup %2118 }
 0x4f5   :  { %v3039_v18 = vadd.f32 1.0, %v2119_v0  ;;  %v2121_v41 = vpop.eup %2120 }
 0x4f6   :  { %2122 = vpow2.f32 %v1975_v38  ;;  %v3042_v3 = vadd.f32 1.0, %v2121_v41 }
 0x4f7   :  { %2124 = vrcp.f32 %v3036_v59  ;;  %vm1058_vm14 = vweird.f32 %v3039_v18  ;;  %v1062_v17 = vand.u32 2147483647, %v3039_v18 }
 0x4f8   :  { %vm1043_vm11 = vweird.f32 %v3042_v3 }
 0x4f9   :  { %v880_v30 = vpop.f32.mrf.mxu0  ;;  %vm1063_vm6 = vcmp.eq.f32.partialorder %v1062_v17, 8.507059e+37 }
 0x4fa   :  { %v987_v22 = vadd.f32 %v880_v30, %v2723_v28 }
 0x4fc   :  { %v1976_v36 = vmul.f32 -1.442695, %v987_v22  ;;  %v2123_v46 = vpop.eup %2122 }
 0x4fd   :  { %v3045_v12 = vadd.f32 1.0, %v2123_v46  ;;  %v3048_v27 = vpop.eup %2124  ;;  %v1035_v46 = vor.u32 1.1754944e-38, %v1034_v8 }
 0x4fe   :  { %2126 = vpow2.f32 %v1976_v36  ;;  %v1024_v56 = vmul.f32 %v3048_v27, %v3036_v59  ;;  %vm1029_vm10 = vweird.f32 %v3048_v27 }
 0x4ff   :  { %2128 = vrcp.f32 %v3039_v18  ;;  %vm3103_vm13 = vmor %vm1028_vm1, %vm1029_vm10  ;;  %vm1073_vm10 = vweird.f32 %v3045_v12 }
 0x500   :  { %2130 = vrcp.f32 %v3042_v3  ;;  %v1025_v48 = vsub.f32 1.0, %v1024_v56 }
 0x501   :  { %v883_v60 = vpop.f32.mrf.mxu0  ;;  %2132 = vrcp.f32 %v3045_v12 }
 0x502   :  { %v988_v5 = vadd.f32 %v883_v60, %v2727_v44  ;;  %v1026_v34 = vmul.f32 %v3048_v27, %v1025_v48 }
 0x504   :  { %v2127_v25 = vpop.eup %2126  ;;  %v1977_v33 = vmul.f32 -1.442695, %v988_v5  ;;  %v1027_v41 = vadd.f32 %v3048_v27, %v1026_v34  ;;  %v1049_v5 = vand.u32 2147483648, %v3042_v3 }
 0x505   :  { %v3052_v45 = vadd.f32 1.0, %v2127_v25  ;;  %v3054_v19 = vpop.eup %2128 }
 0x506   :  { %2134 = vpow2.f32 %v1977_v33  ;;  %v1054_v4 = vmul.f32 %v3054_v19, %v3039_v18  ;;  %v3061_v32 = vpop.eup %2130  ;;  %vm1059_vm12 = vweird.f32 %v3054_v19  ;;  %v1031_v59 = vsel %vm3103_vm13, %v3048_v27, %v1027_v41 }
 0x507   :  { %2136 = vrcp.f32 %v3052_v45  ;;  %v3064_v15 = vpop.eup %2132  ;;  %v1039_v47 = vmul.f32 %v3061_v32, %v3042_v3  ;;  %vm3117_vm15 = vmor %vm1058_vm14, %vm1059_vm12  ;;  %vm1044_vm2 = vweird.f32 %v3061_v32  ;;  %vm1088_vm4 = vweird.f32 %v3052_v45 }
 0x508   :  { %v1055_v6 = vsub.f32 1.0, %v1054_v4  ;;  %v1069_v61 = vmul.f32 %v3064_v15, %v3045_v12  ;;  %v1050_v41 = vor.u32 1.1754944e-38, %v1049_v5  ;;  %vm1074_vm1 = vweird.f32 %v3064_v15 }
 0x509   :  { %v886_v62 = vpop.f32.mrf.mxu0  ;;  %v1040_v38 = vsub.f32 1.0, %v1039_v47  ;;  %vm3170_vm12 = vmor %vm1073_vm10, %vm1074_vm1 }
 0x50a   :  { %v989_v35 = vadd.f32 %v886_v62, %v2723_v28  ;;  %v1056_v13 = vmul.f32 %v3054_v19, %v1055_v6  ;;  %v1070_v25 = vsub.f32 1.0, %v1069_v61  ;;  %v1047_v6 = vand.u32 2147483647, %v3042_v3 }
 0x50b   :  { %v1041_v62 = vmul.f32 %v3061_v32, %v1040_v38  ;;  %v1079_v3 = vand.u32 2147483648, %v3045_v12 }
 0x50c   :  { %v2135_v43 = vpop.eup %2134  ;;  %v1978_v23 = vmul.f32 -1.442695, %v989_v35  ;;  %v1057_v35 = vadd.f32 %v3054_v19, %v1056_v13  ;;  %v1071_v34 = vmul.f32 %v3064_v15, %v1070_v25  ;;  %v1092_v13 = vand.u32 2147483647, %v3052_v45 }
 0x50d   :  { %v3066_v54 = vpop.eup %2136  ;;  %v3070_v58 = vadd.f32 1.0, %v2135_v43  ;;  %v1042_v38 = vadd.f32 %v3061_v32, %v1041_v62  ;;  %vm3139_vm8 = vcmp.eq.f32.partialorder %v1047_v6, 8.507059e+37 }
 0x50e   :  { %v1084_v50 = vmul.f32 %v3066_v54, %v3052_v45  ;;  %2138 = vpow2.f32 %v1978_v23  ;;  %v1064_v23 = vand.u32 2147483648, %v3039_v18  ;;  %vm1089_vm0 = vweird.f32 %v3066_v54 }
 0x50f   :  { %2140 = vrcp.f32 %v3070_v58  ;;  %v1061_v18 = vsel %vm3117_vm15, %v3054_v19, %v1057_v35  ;;  %vm3134_vm7 = vmor %vm1088_vm4, %vm1089_vm0  ;;  %v1072_v5 = vadd.f32 %v3064_v15, %v1071_v34  ;;  %vm1103_vm14 = vweird.f32 %v3070_v58 }
 0x510   :  { %v1085_v10 = vsub.f32 1.0, %v1084_v50  ;;  %v1065_v27 = vor.u32 1.1754944e-38, %v1064_v23 }
 0x511   :  { %v889_v0 = vpop.f32.mrf.mxu0 }
 0x512   :  { %v990_v22 = vadd.f32 %v889_v0, %v2727_v44  ;;  %v3087_v36 = vpop.f32.mrf.mxu2  ;;  %v1086_v33 = vmul.f32 %v3066_v54, %v1085_v10  ;;  %v1094_v10 = vand.u32 2147483648, %v3052_v45 }
 0x514   :  { %v2139_v60 = vpop.eup %2138  ;;  %v1979_v56 = vmul.f32 -1.442695, %v990_v22  ;;  %v1087_v61 = vadd.f32 %v3066_v54, %v1086_v33  ;;  %v1036_v22 = vsel %vm3082_vm9, %v1035_v46, %v1031_v59  ;;  %v1066_v33 = vsel %vm1063_vm6, %v1065_v27, %v1061_v18  ;;  %vm3152_vm9 = vmor %vm1043_vm11, %vm1044_vm2 }
 0x515   :  { %v3094_v4 = vpop.eup %2140  ;;  %v3099_v48 = vadd.f32 1.0, %v2139_v60  ;;  %v1095_v62 = vor.u32 1.1754944e-38, %v1094_v10  ;;  %v1143_v43 = vmul.f32 %v1036_v22, %v2976_v52  ;;  %vm1093_vm11 = vcmp.eq.f32.partialorder %v1092_v13, 8.507059e+37 }
 0x516   :  { %v1099_v47 = vmul.f32 %v3094_v4, %v3070_v58  ;;  %2142 = vpow2.f32 %v1979_v56  ;;  %v1091_v30 = vsel %vm3134_vm7, %v3066_v54, %v1087_v61  ;;  %v1046_v54 = vsel %vm3152_vm9, %v3061_v32, %v1042_v38 }
 0x517   :  { %2144 = vrcp.f32 %v3099_v48  ;;  %v1145_v6 = vmul.f32 %v1066_v33, %v2984_v55  ;;  %v1077_v32 = vand.u32 2147483647, %v3045_v12  ;;  %v1076_v59 = vsel %vm3170_vm12, %v3064_v15, %v1072_v5 }
 0x518   :  { %v1100_v8 = vsub.f32 1.0, %v1099_v47  ;;  %v1096_v47 = vsel %vm1093_vm11, %v1095_v62, %v1091_v30  ;;  %vm1104_vm13 = vweird.f32 %v3094_v4  ;;  %v1124_v34 = vand.u32 2147483648, %v3099_v48 }
 0x519   :  { %v1107_v55 = vand.u32 2147483647, %v3070_v58  ;;  %v1122_v12 = vand.u32 2147483647, %v3099_v48  ;;  %v1147_v10 = vmul.f32 %v1096_v47, %v2992_v9  ;;  %v1080_v18 = vor.u32 1.1754944e-38, %v1079_v3  ;;  %vm3189_vm2 = vmor %vm1103_vm14, %vm1104_vm13 }
 0x51a   :  { %v932_v0 = vpop.f32.mrf.mxu2  ;;  %v1101_v45 = vmul.f32 %v3094_v4, %v1100_v8  ;;  %v1109_v8 = vand.u32 2147483648, %v3070_v58  ;;  %v1151_v15 = vsel %vm269_vm3, %v1143_v43, 0.0  ;;  %v1051_v38 = vsel %vm3139_vm8, %v1050_v41, %v1046_v54 }
 0x51b   :  { %939 = vrot.lane.b32.xlu1 %v932_v0, %s2394_s6  ;;  %vm1078_vm0 = vcmp.eq.f32.partialorder %v1077_v32, 8.507059e+37  ;;  %vm1118_vm4 = vweird.f32 %v3099_v48  ;;  %v1152_v13 = vsel %vm269_vm3, %v1145_v6, 0.0  ;;  %v1125_v22 = vor.u32 1.1754944e-38, %v1124_v34 }
 0x51c   :  { %v2143_v25 = vpop.eup %2142  ;;  %v1102_v50 = vadd.f32 %v3094_v4, %v1101_v45  ;;  %v1081_v60 = vsel %vm1078_vm0, %v1080_v18, %v1076_v59  ;;  %vm1108_vm7 = vcmp.eq.f32.partialorder %v1107_v55, 8.507059e+37  ;;  %v1110_v41 = vor.u32 1.1754944e-38, %v1109_v8 }
 0x51d   :  { %v2145_v56 = vpop.eup %2144  ;;  %v3157_v35 = vadd.f32 1.0, %v2143_v25  ;;  %vm1123_vm8 = vcmp.eq.f32.partialorder %v1122_v12, 8.507059e+37  ;;  %v1154_v45 = vsel %vm269_vm3, %v1147_v10, 0.0  ;;  %v1153_v33 = vadd.f32 %v1152_v13, %v1151_v15 }
 0x51e   :  { %v1114_v23 = vmul.f32 %v2145_v56, %v3099_v48  ;;  %vm1119_vm15 = vweird.f32 %v2145_v56  ;;  %v1106_v9 = vsel %vm3189_vm2, %v3094_v4, %v1102_v50  ;;  %v1146_v4 = vmul.f32 %v1081_v60, %v2988_v57 }
 0x51f   :  { %2146 = vrcp.f32 %v3157_v35  ;;  %vm1120_vm6 = vmor %vm1118_vm4, %vm1119_vm15  ;;  %v1111_v30 = vsel %vm1108_vm7, %v1110_v41, %v1106_v9  ;;  %v1155_v62 = vadd.f32 %v1154_v45, %v1153_v33  ;;  %v1137_v43 = vand.u32 2147483647, %v3157_v35 }
 0x520   :  { %v1115_v17 = vsub.f32 1.0, %v1114_v23  ;;  %v1139_v54 = vand.u32 2147483648, %v3157_v35  ;;  %v1144_v3 = vmul.f32 %v1051_v38, %v2980_v53  ;;  %v1148_v47 = vmul.f32 %v1111_v30, %v2996_v29 }
 0x521   :  { %vm1133_vm9 = vweird.f32 %v3157_v35  ;;  %vm1138_vm11 = vcmp.eq.f32.partialorder %v1137_v43, 8.507059e+37 }
 0x522   :  { %v1116_v61 = vmul.f32 %v2145_v56, %v1115_v17  ;;  %v1140_v57 = vor.u32 1.1754944e-38, %v1139_v54  ;;  %v1158_v53 = vsel %vm269_vm3, %v1144_v3, 0.0  ;;  %v1161_v17 = vsel %vm269_vm3, %v1148_v47, 0.0 }
 0x524   :  { %v1117_v58 = vadd.f32 %v2145_v56, %v1116_v61 }
 0x525   :  { %v2147_v0 = vpop.eup %2146 }
 0x526   :  { %v1129_v19 = vmul.f32 %v2147_v0, %v3157_v35  ;;  %v1121_v25 = vsel %vm1120_vm6, %v2145_v56, %v1117_v58  ;;  %vm1134_vm1 = vweird.f32 %v2147_v0 }
 0x527   :  { %v1126_v48 = vsel %vm1123_vm8, %v1125_v22, %v1121_v25  ;;  %vm1135_vm10 = vmor %vm1133_vm9, %vm1134_vm1 }
 0x528   :  { %v1130_v46 = vsub.f32 1.0, %v1129_v19  ;;  %v1149_v5 = vmul.f32 %v1126_v48, %v3006_v11  ;;  %v1159_v11 = vsel %vm269_vm3, %v1146_v4, 0.0 }
 0x529   :  { %v1160_v50 = vadd.f32 %v1159_v11, %v1158_v53 }
 0x52a   :  { %v1156_v56 = vsel %vm269_vm3, %v1149_v5, 0.0  ;;  %v1131_v23 = vmul.f32 %v2147_v0, %v1130_v46 }
 0x52b   :  { %v1157_v6 = vadd.f32 %v1156_v56, %v1155_v62  ;;  %v1162_v34 = vadd.f32 %v1161_v17, %v1160_v50 }
 0x52c   :  { %v1132_v52 = vadd.f32 %v2147_v0, %v1131_v23 }
 0x52d   :  { %1980 = vmatmul.msk.f32.vlgmr.msrb.gmra.mxu3 %vm269_vm3, %v1157_v6 }
 0x52e   :  { %v1136_v32 = vsel %vm1135_vm10, %v2147_v0, %v1132_v52 }
 0x52f   :  { %v1141_v59 = vsel %vm1138_vm11, %v1140_v57, %v1136_v32 }
 0x530   :  { %v1150_v29 = vmul.f32 %v1141_v59, %v3022_v14 }
 0x532   :  { %v1163_v55 = vsel %vm269_vm3, %v1150_v29, 0.0 }
 0x533   :  { %v1164_v35 = vadd.f32 %v1163_v55, %v1162_v34 }
 0x535   :  { %1981 = vmatmul.msk.f32.gmra.mxu3 %vm269_vm3, %v1164_v35 }
 0x58d   :  { %v940_v27 = vpop.permute.xlu1 %939 }
 0x5b0   :  { %v1188_v8 = vpop.f32.mrf.mxu3 }
 0x5b1   :  { %1196 = vrot.lane.b32.xlu0 %v1188_v8, %s2395_s5 }
 0x5b8   :  { %v1191_v61 = vpop.f32.mrf.mxu3 }
 0x5b9   :  { %1210 = vrot.lane.b32.xlu0 %v3028_v20, %s2394_s6  ;;  %1198 = vrot.lane.b32.xlu2 %v1191_v61, %s2395_s5 }
 0x5c1   :  { %937 = vrot.lane.b32.xlu2 %v3087_v36, %s2394_s6 }
 0x5c9   :  { %1208 = vrot.lane.b32.xlu2 %v3012_v63, %s2394_s6  ;;  %v944_v63 = vadd.f32 %v940_v27, %v2727_v44 }
 0x5cb   :  { %v1971_v13 = vmul.f32 -1.442695, %v944_v63 }
 0x613   :  { %v1199_v14 = vpop.permute.xlu2 %1198 }
 0x614   :  { %v1203_v12 = vadd.f32 %v1199_v14, %v2727_v44 }
 0x616   :  { %2148 = vtanh.f32 %v1203_v12 }
 0x61b   :  { %v938_v38 = vpop.permute.xlu2 %937 }
 0x61c   :  { %v2149_v10 = vpop.eup %2148  ;;  %v943_v36 = vadd.f32 %v938_v38, %v2723_v28 }
 0x61d   :  { %1220 = vrot.lane.b32.xlu1 %v2149_v10, %s2396_s7 }
 0x61e   :  { %v1970_v58 = vmul.f32 -1.442695, %v943_v36 }
 0x623   :  { %v1197_v18 = vpop.permute.xlu0 %1196  ;;  %v1209_v50 = vpop.permute.xlu2 %1208 }
 0x624   :  { %v1202_v15 = vadd.f32 %v1197_v18, %v2723_v28 }
 0x626   :  { %2150 = vtanh.f32 %v1202_v15 }
 0x627   :  { %2152 = vpow2.f32 %v1970_v58 }
 0x628   :  { %2154 = vpow2.f32 %v1971_v13 }
 0x62b   :  { %v1211_v47 = vpop.permute.xlu0 %1210 }
 0x62c   :  { %v2151_v20 = vpop.eup %2150 }
 0x62d   :  { %1218 = vrot.lane.b32.xlu0 %v2151_v20, %s2396_s7  ;;  %v2153_v9 = vpop.eup %2152 }
 0x62e   :  { %v2155_v0 = vpop.eup %2154  ;;  %v951_v22 = vadd.f32 1.0, %v2153_v9 }
 0x62f   :  { %v952_v60 = vadd.f32 1.0, %v2155_v0 }
 0x630   :  { %2156 = vrcp.f32 %v951_v22  ;;  %v964_v4 = vand.u32 2147483648, %v951_v22  ;;  %vm958_vm13 = vweird.f32 %v951_v22  ;;  %v962_v62 = vand.u32 2147483647, %v951_v22 }
 0x631   :  { %2158 = vrcp.f32 %v952_v60  ;;  %v979_v54 = vand.u32 2147483648, %v952_v60  ;;  %vm973_vm0 = vweird.f32 %v952_v60  ;;  %v977_v56 = vand.u32 2147483647, %v952_v60 }
 0x632   :  { %v965_v23 = vor.u32 1.1754944e-38, %v964_v4  ;;  %vm963_vm4 = vcmp.eq.f32.partialorder %v962_v62, 8.507059e+37 }
 0x633   :  { %v980_v11 = vor.u32 1.1754944e-38, %v979_v54  ;;  %vm978_vm6 = vcmp.eq.f32.partialorder %v977_v56, 8.507059e+37 }
 0x636   :  { %v2157_v41 = vpop.eup %2156 }
 0x637   :  { %v2159_v19 = vpop.eup %2158  ;;  %v954_v25 = vmul.f32 %v2157_v41, %v951_v22  ;;  %vm959_vm12 = vweird.f32 %v2157_v41 }
 0x638   :  { %v969_v45 = vmul.f32 %v2159_v19, %v952_v60  ;;  %vm974_vm14 = vweird.f32 %v2159_v19  ;;  %vm960_vm15 = vmor %vm958_vm13, %vm959_vm12 }
 0x639   :  { %v955_v48 = vsub.f32 1.0, %v954_v25  ;;  %vm975_vm2 = vmor %vm973_vm0, %vm974_vm14 }
 0x63a   :  { %v970_v33 = vsub.f32 1.0, %v969_v45 }
 0x63b   :  { %v956_v30 = vmul.f32 %v2157_v41, %v955_v48 }
 0x63c   :  { %v971_v46 = vmul.f32 %v2159_v19, %v970_v33 }
 0x63d   :  { %v957_v5 = vadd.f32 %v2157_v41, %v956_v30 }
 0x63e   :  { %v972_v43 = vadd.f32 %v2159_v19, %v971_v46 }
 0x63f   :  { %v961_v3 = vsel %vm960_vm15, %v2157_v41, %v957_v5 }
 0x640   :  { %v976_v6 = vsel %vm975_vm2, %v2159_v19, %v972_v43  ;;  %v966_v52 = vsel %vm963_vm4, %v965_v23, %v961_v3 }
 0x641   :  { %v981_v57 = vsel %vm978_vm6, %v980_v11, %v976_v6  ;;  %v1206_v53 = vsub.f32 1.0, %v966_v52 }
 0x642   :  { %v1207_v17 = vsub.f32 1.0, %v981_v57 }
 0x643   :  { %v1214_v34 = vmul.f32 %v1209_v50, %v1206_v53 }
 0x644   :  { %v1215_v55 = vmul.f32 %v1211_v47, %v1207_v17 }
 0x68f   :  { %v1221_v32 = vpop.permute.xlu1 %1220 }
 0x690   :  { %v1225_v59 = vmul.f32 %v1221_v32, %v981_v57 }
 0x692   :  { %v1227_v8 = vadd.f32 %v1225_v59, %v1215_v55 }
 0x69f   :  { %v1219_v29 = vpop.permute.xlu0 %1218 }
 0x6a0   :  { %v1224_v35 = vmul.f32 %v1219_v29, %v966_v52 }
 0x6a2   :  { %v1226_v61 = vadd.f32 %v1224_v35, %v1214_v34 }
 0x6a4   :  { %v2057_v14 = vpack.i.bf16 %v1226_v61, %v1227_v8 }
 0x6a6   :  { %2058 = vrot.lane.b32.xlu1 %v2057_v14, %s2396_s7 }
 0x718   :  { %v2059_v12 = vpop.permute.xlu1 %2058 }
 0x719   :  { %v2060_v10 = vunpack.i.l.bf16 %v2059_v12  ;;  %v2061_v18 = vunpack.i.h.bf16 %v2059_v12 }
 0x71b   :  { %1250 = vmatpush.msra.mxu2 %v2060_v10 }
 0x71d   :  { %1251 = vmatpush.msra.mxu2 %v2061_v18 }
 0x71e   :  { %1982 = vmatmul.msk.f32.vlgmr.msra.gmra.mxu2 %vm311_vm5, %v2539_v21 }
 0x726   :  { %1983 = vmatmul.msk.f32.gmra.mxu2 %vm311_vm5, %v2548_v24 }
 0x72e   :  { %1984 = vmatmul.msk.f32.gmra.mxu2 %vm311_vm5, %v2555_v26 }
 0x736   :  { %1985 = vmatmul.msk.f32.gmra.mxu2 %vm311_vm5, %v2568_v31 }
 0x73e   :  { %1986 = vmatmul.msk.f32.gmra.mxu2 %vm311_vm5, %v2589_v37 }
 0x746   :  { %1987 = vmatmul.msk.f32.gmra.mxu2 %vm311_vm5, %v2597_v39 }
 0x74e   :  { %1988 = vmatmul.msk.f32.gmra.mxu2 %vm311_vm5, %v2605_v40 }
 0x756   :  { %1989 = vmatmul.msk.f32.gmra.mxu2 %vm311_vm5, %v2613_v42 }
 0x7a1   :  { %v3246_v21 = vpop.f32.mrf.mxu2 }
 0x7a2   :  { %1990 = vmatmul.msk.f32.vlgmr.msra.gmra.mxu3 %vm269_vm3, %v3246_v21  ;;  %v1342_v42 = vsel %vm269_vm3, %v3246_v21, 0.0 }
 0x7a9   :  { %v3250_v24 = vpop.f32.mrf.mxu2 }
 0x7aa   :  { %1991 = vmatmul.msk.f32.gmra.mxu3 %vm269_vm3, %v3250_v24  ;;  %v1349_v13 = vsel %vm269_vm3, %v3250_v24, 0.0 }
 0x7b1   :  { %v3254_v26 = vpop.f32.mrf.mxu2 }
 0x7b2   :  { %1992 = vmatmul.msk.f32.gmra.mxu3 %vm269_vm3, %v3254_v26  ;;  %v1343_v40 = vsel %vm269_vm3, %v3254_v26, 0.0 }
 0x7b3   :  { %v1344_v20 = vadd.f32 %v1343_v40, %v1342_v42 }
 0x7b9   :  { %v3258_v31 = vpop.f32.mrf.mxu2 }
 0x7ba   :  { %1993 = vmatmul.msk.f32.gmra.mxu3 %vm269_vm3, %v3258_v31  ;;  %v1350_v58 = vsel %vm269_vm3, %v3258_v31, 0.0 }
 0x7bb   :  { %v1351_v0 = vadd.f32 %v1350_v58, %v1349_v13 }
 0x7c1   :  { %v3262_v37 = vpop.f32.mrf.mxu2 }
 0x7c2   :  { %1994 = vmatmul.msk.f32.gmra.mxu3 %vm269_vm3, %v3262_v37  ;;  %v1345_v15 = vsel %vm269_vm3, %v3262_v37, 0.0 }
 0x7c3   :  { %v1346_v38 = vadd.f32 %v1345_v15, %v1344_v20 }
 0x7c9   :  { %v3266_v39 = vpop.f32.mrf.mxu2 }
 0x7ca   :  { %1995 = vmatmul.msk.f32.gmra.mxu3 %vm269_vm3, %v3266_v39  ;;  %v1352_v9 = vsel %vm269_vm3, %v3266_v39, 0.0 }
 0x7cb   :  { %v1353_v22 = vadd.f32 %v1352_v9, %v1351_v0 }
 0x7d1   :  { %v3276_v27 = vpop.f32.mrf.mxu2 }
 0x7d2   :  { %v1347_v36 = vsel %vm269_vm3, %v3276_v27, 0.0  ;;  %1996 = vmatmul.msk.f32.gmra.mxu3 %vm269_vm3, %v3276_v27 }
 0x7d3   :  { %v3282_v63 = vadd.f32 %v1347_v36, %v1346_v38 }
 0x7d5   :  { %1998 = vmatmul.msk.f32.vlgmr.msrb.gmra.mxu1 %vm269_vm3, %v3282_v63 }
 0x7d9   :  { %v3292_v60 = vpop.f32.mrf.mxu2 }
 0x7da   :  { %v1354_v41 = vsel %vm269_vm3, %v3292_v60, 0.0  ;;  %1997 = vmatmul.msk.f32.gmra.mxu3 %vm269_vm3, %v3292_v60 }
 0x7db   :  { %v3298_v19 = vadd.f32 %v1354_v41, %v1353_v22 }
 0x7dd   :  { %1999 = vmatmul.msk.f32.gmra.mxu1 %vm269_vm3, %v3298_v19 }
 0x825   :  { %v1318_v25 = vpop.f32.mrf.mxu3 }
 0x826   :  { %v1433_v48 = vadd.f32 %v1318_v25, %v2723_v28 }
 0x828   :  { %v2002_v46 = vmul.f32 -1.442695, %v1433_v48 }
 0x82a   :  { %2160 = vpow2.f32 %v2002_v46 }
 0x82d   :  { %v1321_v45 = vpop.f32.mrf.mxu3 }
 0x82e   :  { %v1434_v5 = vadd.f32 %v1321_v45, %v2727_v44 }
 0x830   :  { %v2003_v54 = vmul.f32 -1.442695, %v1434_v5  ;;  %v2161_v56 = vpop.eup %2160 }
 0x831   :  { %v3306_v47 = vadd.f32 1.0, %v2161_v56 }
 0x833   :  { %v1482_v22 = vand.u32 2147483647, %v3306_v47  ;;  %v1484_v45 = vand.u32 2147483648, %v3306_v47  ;;  %vm1478_vm7 = vweird.f32 %v3306_v47 }
 0x835   :  { %v1324_v33 = vpop.f32.mrf.mxu3  ;;  %vm3355_vm8 = vcmp.eq.f32.partialorder %v1482_v22, 8.507059e+37 }
 0x836   :  { %v1435_v30 = vadd.f32 %v1324_v33, %v2723_v28 }
 0x838   :  { %v2004_v4 = vmul.f32 -1.442695, %v1435_v30 }
 0x83a   :  { %2162 = vpow2.f32 %v2004_v4 }
 0x83b   :  { %2164 = vpow2.f32 %v2003_v54 }
 0x83d   :  { %v1327_v62 = vpop.f32.mrf.mxu3 }
 0x83e   :  { %v1436_v43 = vadd.f32 %v1327_v62, %v2727_v44 }
 0x840   :  { %v2005_v3 = vmul.f32 -1.442695, %v1436_v43  ;;  %v2163_v23 = vpop.eup %2162 }
 0x841   :  { %v3309_v11 = vadd.f32 1.0, %v2163_v23  ;;  %v2165_v32 = vpop.eup %2164 }
 0x842   :  { %2166 = vpow2.f32 %v2005_v3  ;;  %v3312_v17 = vadd.f32 1.0, %v2165_v32 }
 0x843   :  { %2168 = vrcp.f32 %v3306_v47  ;;  %vm1508_vm12 = vweird.f32 %v3309_v11 }
 0x844   :  { %vm1493_vm9 = vweird.f32 %v3312_v17  ;;  %v1499_v3 = vand.u32 2147483648, %v3312_v17 }
 0x845   :  { %v1330_v6 = vpop.f32.mrf.mxu3 }
 0x846   :  { %v1437_v52 = vadd.f32 %v1330_v6, %v2723_v28  ;;  %v1500_v22 = vor.u32 1.1754944e-38, %v1499_v3 }
 0x848   :  { %v2006_v57 = vmul.f32 -1.442695, %v1437_v52  ;;  %v2167_v53 = vpop.eup %2166  ;;  %v3368_v52 = vld [vmem:[%s3559_s2] sm:$0xff] }
 0x849   :  { %v3315_v59 = vadd.f32 1.0, %v2167_v53  ;;  %v3318_v34 = vpop.eup %2168 }
 0x84a   :  { %2170 = vpow2.f32 %v2006_v57  ;;  %v1474_v12 = vmul.f32 %v3318_v34, %v3306_v47  ;;  %vm1479_vm1 = vweird.f32 %v3318_v34  ;;  %v1512_v47 = vand.u32 2147483647, %v3309_v11 }
 0x84b   :  { %2172 = vrcp.f32 %v3309_v11  ;;  %vm3379_vm11 = vmor %vm1478_vm7, %vm1479_vm1  ;;  %vm1523_vm1 = vweird.f32 %v3315_v59 }
 0x84c   :  { %2174 = vrcp.f32 %v3312_v17  ;;  %v1475_v20 = vsub.f32 1.0, %v1474_v12  ;;  %vm1513_vm2 = vcmp.eq.f32.partialorder %v1512_v47, 8.507059e+37 }
 0x84d   :  { %v1333_v50 = vpop.f32.mrf.mxu3  ;;  %2176 = vrcp.f32 %v3315_v59 }
 0x84e   :  { %v1438_v29 = vadd.f32 %v1333_v50, %v2727_v44  ;;  %v1476_v25 = vmul.f32 %v3318_v34, %v1475_v20 }
 0x850   :  { %v2171_v55 = vpop.eup %2170  ;;  %v2007_v35 = vmul.f32 -1.442695, %v1438_v29  ;;  %v1477_v43 = vadd.f32 %v3318_v34, %v1476_v25 }
 0x851   :  { %v3322_v8 = vadd.f32 1.0, %v2171_v55  ;;  %v3324_v61 = vpop.eup %2172  ;;  %v1514_v55 = vand.u32 2147483648, %v3309_v11 }
 0x852   :  { %2178 = vpow2.f32 %v2007_v35  ;;  %v1379_v14 = vpop.f32.mrf.mxu1  ;;  %v1504_v10 = vmul.f32 %v3324_v61, %v3309_v11  ;;  %v3332_v40 = vpop.eup %2174  ;;  %vm1509_vm10 = vweird.f32 %v3324_v61  ;;  %v1481_v12 = vsel %vm3379_vm11, %v3318_v34, %v1477_v43 }
 0x853   :  { %2180 = vrcp.f32 %v3322_v8  ;;  %1387 = vrot.lane.b32.xlu1 %v1379_v14, %s2394_s6  ;;  %v3335_v15 = vpop.eup %2176  ;;  %v1489_v13 = vmul.f32 %v3332_v40, %v3312_v17  ;;  %v1497_v14 = vand.u32 2147483647, %v3312_v17  ;;  %vm3394_vm13 = vmor %vm1508_vm12, %vm1509_vm10  ;;  %v1544_v11 = vand.u32 2147483648, %v3322_v8 }
 0x854   :  { %v1505_v9 = vsub.f32 1.0, %v1504_v10  ;;  %v1519_v48 = vmul.f32 %v3335_v15, %v3315_v59  ;;  %vm1494_vm15 = vweird.f32 %v3332_v40  ;;  %vm1538_vm0 = vweird.f32 %v3322_v8 }
 0x855   :  { %v1336_v18 = vpop.f32.mrf.mxu3  ;;  %v1490_v30 = vsub.f32 1.0, %v1489_v13  ;;  %v1515_v13 = vor.u32 1.1754944e-38, %v1514_v55  ;;  %vm3415_vm6 = vcmp.eq.f32.partialorder %v1497_v14, 8.507059e+37  ;;  %vm1524_vm7 = vweird.f32 %v3335_v15 }
 0x856   :  { %v1439_v42 = vadd.f32 %v1336_v18, %v2723_v28  ;;  %v1506_v46 = vmul.f32 %v3324_v61, %v1505_v9  ;;  %v1520_v56 = vsub.f32 1.0, %v1519_v48  ;;  %v1542_v9 = vand.u32 2147483647, %v3322_v8  ;;  %vm3444_vm10 = vmor %vm1523_vm1, %vm1524_vm7 }
 0x857   :  { %v1491_v32 = vmul.f32 %v3332_v40, %v1490_v30  ;;  %v1529_v17 = vand.u32 2147483648, %v3315_v59 }
 0x858   :  { %v2179_v38 = vpop.eup %2178  ;;  %v2008_v36 = vmul.f32 -1.442695, %v1439_v42  ;;  %v1507_v53 = vadd.f32 %v3324_v61, %v1506_v46  ;;  %v1521_v18 = vmul.f32 %v3335_v15, %v1520_v56 }
 0x859   :  { %v3337_v58 = vpop.eup %2180  ;;  %v3341_v0 = vadd.f32 1.0, %v2179_v38  ;;  %v1492_v38 = vadd.f32 %v3332_v40, %v1491_v32  ;;  %v1530_v29 = vor.u32 1.1754944e-38, %v1529_v17 }
 0x85a   :  { %v1534_v41 = vmul.f32 %v3337_v58, %v3322_v8  ;;  %2182 = vpow2.f32 %v2008_v36  ;;  %vm1539_vm14 = vweird.f32 %v3337_v58  ;;  %v1511_v34 = vsel %vm3394_vm13, %v3324_v61, %v1507_v53 }
 0x85b   :  { %2184 = vrcp.f32 %v3341_v0  ;;  %1660 = vrot.lane.b32.xlu1 %v3298_v19, %s2394_s6  ;;  %v1485_v19 = vor.u32 1.1754944e-38, %v1484_v45  ;;  %vm3411_vm4 = vmor %vm1538_vm0, %vm1539_vm14  ;;  %v1516_v45 = vsel %vm1513_vm2, %v1515_v13, %v1511_v34  ;;  %v1522_v30 = vadd.f32 %v3335_v15, %v1521_v18 }
 0x85c   :  { %v1535_v33 = vsub.f32 1.0, %v1534_v41  ;;  %vm1553_vm12 = vweird.f32 %v3341_v0 }
 0x85d   :  { %v1339_v5 = vpop.f32.mrf.mxu3  ;;  %v1486_v36 = vsel %vm3355_vm8, %v1485_v19, %v1481_v12  ;;  %vm3426_vm8 = vmor %vm1493_vm9, %vm1494_vm15  ;;  %vm1543_vm9 = vcmp.eq.f32.partialorder %v1542_v9, 8.507059e+37  ;;  %v1526_v56 = vsel %vm3444_vm10, %v3335_v15, %v1522_v30 }
 0x85e   :  { %v1440_v62 = vadd.f32 %v1339_v5, %v2727_v44  ;;  %v1536_v23 = vmul.f32 %v3337_v58, %v1535_v33  ;;  %v1545_v5 = vor.u32 1.1754944e-38, %v1544_v11 }
 0x860   :  { %v2183_v54 = vpop.eup %2182  ;;  %v2009_v6 = vmul.f32 -1.442695, %v1440_v62  ;;  %v1537_v42 = vadd.f32 %v3337_v58, %v1536_v23  ;;  %v1593_v62 = vmul.f32 %v1486_v36, %v3246_v21 }
 0x861   :  { %v3370_v57 = vpop.eup %2184  ;;  %v3375_v50 = vadd.f32 1.0, %v2183_v54  ;;  %v1595_v54 = vmul.f32 %v1516_v45, %v3254_v26 }
 0x862   :  { %v1549_v35 = vmul.f32 %v3370_v57, %v3341_v0  ;;  %2186 = vpow2.f32 %v2009_v6  ;;  %v1541_v48 = vsel %vm3411_vm4, %v3337_v58, %v1537_v42  ;;  %v1496_v58 = vsel %vm3426_vm8, %v3332_v40, %v1492_v38 }
 0x863   :  { %2188 = vrcp.f32 %v3375_v50  ;;  %1704 = vperm.xlu1 %2049, %v3368_v52   ;;  %v1546_v19 = vsel %vm1543_vm9, %v1545_v5, %v1541_v48  ;;  %v1527_v40 = vand.u32 2147483647, %v3315_v59  ;;  %vm1554_vm11 = vweird.f32 %v3370_v57 }
 0x864   :  { %v1550_v20 = vsub.f32 1.0, %v1549_v35  ;;  %v1574_v26 = vand.u32 2147483648, %v3375_v50  ;;  %v1557_v6 = vand.u32 2147483647, %v3341_v0  ;;  %v1559_v59 = vand.u32 2147483648, %v3341_v0  ;;  %vm3465_vm15 = vmor %vm1553_vm12, %vm1554_vm11 }
 0x865   :  { %v1572_v53 = vand.u32 2147483647, %v3375_v50  ;;  %v1597_v15 = vmul.f32 %v1546_v19, %v3262_v37  ;;  %v1601_v55 = vsel %vm269_vm3, %v1593_v62, 0.0  ;;  %v1501_v35 = vsel %vm3415_vm6, %v1500_v22, %v1496_v58  ;;  %v1382_v19 = vpop.f32.mrf.mxu1 }
 0x866   :  { %v1551_v8 = vmul.f32 %v3370_v57, %v1550_v20  ;;  %vm1528_vm14 = vcmp.eq.f32.partialorder %v1527_v40, 8.507059e+37  ;;  %vm1568_vm0 = vweird.f32 %v3375_v50  ;;  %v1602_v0 = vsel %vm269_vm3, %v1595_v54, 0.0 }
 0x867   :  { %v1575_v10 = vor.u32 1.1754944e-38, %v1574_v26  ;;  %v1531_v18 = vsel %vm1528_vm14, %v1530_v29, %v1526_v56  ;;  %vm1558_vm4 = vcmp.eq.f32.partialorder %v1557_v6, 8.507059e+37  ;;  %v1560_v42 = vor.u32 1.1754944e-38, %v1559_v59  ;;  %v1702_v29 = vld [vmem:[%s3559_s2 + $0x8] sm:$0xff]  ;;  %s2397_s2 = smov [#allocation12]  }
 0x868   :  { %v2187_v25 = vpop.eup %2186  ;;  %v1552_v23 = vadd.f32 %v3370_v57, %v1551_v8  ;;  %vm1573_vm6 = vcmp.eq.f32.partialorder %v1572_v53, 8.507059e+37  ;;  %v1604_v11 = vsel %vm269_vm3, %v1597_v15, 0.0  ;;  %v3625_v59 = vmov 1   ;;  %s1881_s1 = sshll.u32 %s2397_s2, 4  ;;  %s1882_s1 = int_to_ptr.vmem [resolvable:$true] %s1881_s1 }
 0x869   :  { %v2189_v46 = vpop.eup %2188  ;;  %v3431_v4 = vadd.f32 1.0, %v2187_v25  ;;  %v1594_v25 = vmul.f32 %v1501_v35, %v3250_v24 }
 0x86a   :  { %v1564_v43 = vmul.f32 %v2189_v46, %v3375_v50  ;;  %vm1569_vm13 = vweird.f32 %v2189_v46  ;;  %v1556_v37 = vsel %vm3465_vm15, %v3370_v57, %v1552_v23  ;;  %v1603_v50 = vadd.f32 %v1602_v0, %v1601_v55 }
 0x86b   :  { %2190 = vrcp.f32 %v3431_v4  ;;  %2064 = vset.pattern.permute.xlu1 %v2392_v7  ;;  %vm1570_vm2 = vmor %vm1568_vm0, %vm1569_vm13  ;;  %v1561_v36 = vsel %vm1558_vm4, %v1560_v42, %v1556_v37  ;;  %v1596_v57 = vmul.f32 %v1531_v18, %v3258_v31  ;;  %v1587_v41 = vand.u32 2147483647, %v3431_v4 }
 0x86c   :  { %v1565_v3 = vsub.f32 1.0, %v1564_v43  ;;  %1746 = vperm.xlu1 %2064, %v3368_v52   ;;  %v1605_v22 = vadd.f32 %v1604_v11, %v1603_v50  ;;  %v1589_v61 = vand.u32 2147483648, %v3431_v4  ;;  %v1598_v8 = vmul.f32 %v1561_v36, %v3266_v39 }
 0x86d   :  { %vm1583_vm8 = vweird.f32 %v3431_v4  ;;  %v1609_v31 = vsel %vm269_vm3, %v1596_v57, 0.0  ;;  %vm1588_vm9 = vcmp.eq.f32.partialorder %v1587_v41, 8.507059e+37  ;;  %v1608_v24 = vsel %vm269_vm3, %v1594_v25, 0.0 }
 0x86e   :  { %v1566_v32 = vmul.f32 %v2189_v46, %v1565_v3  ;;  %v1610_v62 = vadd.f32 %v1609_v31, %v1608_v24  ;;  %v3627_v50 = vmov 0.0  }
 0x870   :  { %v1567_v12 = vadd.f32 %v2189_v46, %v1566_v32 }
 0x871   :  { %v2191_v47 = vpop.eup %2190 }
 0x872   :  { %v1579_v20 = vmul.f32 %v2191_v47, %v3431_v4  ;;  %v1571_v34 = vsel %vm1570_vm2, %v2189_v46, %v1567_v12  ;;  %vm1584_vm7 = vweird.f32 %v2191_v47  ;;  %v1611_v46 = vsel %vm269_vm3, %v1598_v8, 0.0 }
 0x873   :  { %v1576_v38 = vsel %vm1573_vm6, %v1575_v10, %v1571_v34  ;;  %vm1585_vm1 = vmor %vm1583_vm8, %vm1584_vm7  ;;  %v1612_v58 = vadd.f32 %v1611_v46, %v1610_v62 }
 0x874   :  { %v1580_v13 = vsub.f32 1.0, %v1579_v20  ;;  %v1599_v9 = vmul.f32 %v1576_v38, %v3276_v27  ;;  %2067 = vset.pattern.permute.xlu1 %v2391_v2  ;;  %v1590_v2 = vor.u32 1.1754944e-38, %v1589_v61 }
 0x876   :  { %v1606_v45 = vsel %vm269_vm3, %v1599_v9, 0.0  ;;  %v1581_v48 = vmul.f32 %v2191_v47, %v1580_v13 }
 0x877   :  { %v1607_v33 = vadd.f32 %v1606_v45, %v1605_v22 }
 0x878   :  { %v1582_v30 = vadd.f32 %v2191_v47, %v1581_v48 }
 0x879   :  { %2010 = vmatmul.msk.f32.vlgmr.msrb.gmra.mxu0 %vm269_vm3, %v1607_v33 }
 0x87a   :  { %v1586_v27 = vsel %vm1585_vm1, %v2191_v47, %v1582_v30  ;;  %v3626_v47 = vlaneseq }
 0x87b   :  { %v1591_v5 = vsel %vm1588_vm9, %v1590_v2, %v1586_v27 }
 0x87c   :  { %v1600_v39 = vmul.f32 %v1591_v5, %v3292_v60  ;;  %v1679_v10 = vshrl.u32 %v3626_v47, 7  ;;  %v1788_v47 = vld [vmem:[#allocation8] sm:$0xff] }
 0x87e   :  { %v1613_v17 = vsel %vm269_vm3, %v1600_v39, 0.0  ;;  %vm1681_vm14 = vcmp.ne.s32.totalorder %v1679_v10, 0 }
 0x87f   :  { %v1614_v4 = vadd.f32 %v1613_v17, %v1612_v58  ;;  %v2012_v36 = vsel %vm1681_vm14, 1.0, %v3627_v50 }
 0x881   :  { %2011 = vmatmul.msk.f32.gmra.mxu0 %vm269_vm3, %v1614_v4 }
 0x8c5   :  { %v1388_v26 = vpop.permute.xlu1 %1387 }
 0x8cd   :  { %v1661_v24 = vpop.permute.xlu1 %1660 }
 0x8d5   :  { %v1705_v58 = vpop.permute.xlu1 %1704 }
 0x8d6   :  { %vm1709_vm7 = vcmp.eq.s32.totalorder %v2529_v16, %v1705_v58 }
 0x8de   :  { %v1747_v17 = vpop.permute.xlu1 %1746 }
 0x8df   :  { %vm1751_vm1 = vcmp.eq.s32.totalorder %v2529_v16, %v1747_v17 }
 0x8f6   :  { %v1638_v43 = vpop.f32.mrf.mxu0 }
 0x8f7   :  { %1646 = vrot.lane.b32.xlu2 %v1638_v43, %s2395_s5 }
 0x8fe   :  { %v1641_v54 = vpop.f32.mrf.mxu0 }
 0x8ff   :  { %1389 = vrot.lane.b32.xlu2 %v1382_v19, %s2394_s6  ;;  %1648 = vrot.lane.b32.xlu0 %v1641_v54, %s2395_s5 }
 0x907   :  { %1658 = vrot.lane.b32.xlu0 %v3282_v63, %s2394_s6  ;;  %v1393_v63 = vadd.f32 %v1388_v26, %v2723_v28  ;;  %v1795_v26 = vld [vmem:[#allocation10 + $0x18] sm:$0xff] }
 0x908   :  { %1814 = vmatpush.msra.mxu0 %v1795_v26 }
 0x909   :  { %v2000_v6 = vmul.f32 -1.442695, %v1393_v63  ;;  %v1794_v63 = vld [vmem:[#allocation10 + $0x10] sm:$0xff] }
 0x90a   :  { %1815 = vmatpush.msra.mxu0 %v1794_v63 }
 0x951   :  { %v1647_v21 = vpop.permute.xlu2 %1646 }
 0x952   :  { %v1652_v60 = vadd.f32 %v1647_v21, %v2723_v28 }
 0x954   :  { %2192 = vtanh.f32 %v1652_v60 }
 0x959   :  { %v1390_v12 = vpop.permute.xlu2 %1389 }
 0x95a   :  { %v2193_v40 = vpop.eup %2192  ;;  %v1394_v11 = vadd.f32 %v1390_v12, %v2727_v44 }
 0x95b   :  { %1668 = vrot.lane.b32.xlu2 %v2193_v40, %s2396_s7  ;;  %v2013_v40 = vsel %vm1709_vm7, 1.0, %v3627_v50 }
 0x95c   :  { %v2001_v9 = vmul.f32 -1.442695, %v1394_v11 }
 0x963   :  { %1718 = vperm.xlu2 %2062, %v3368_v52  }
 0x96b   :  { %2065 = vset.pattern.permute.xlu2 %v2390_v1 }
 0x96c   :  { %1707 = vperm.xlu2 %2065, %v1702_v29  }
 0x971   :  { %v1649_v3 = vpop.permute.xlu0 %1648 }
 0x972   :  { %v1653_v56 = vadd.f32 %v1649_v3, %v2727_v44 }
 0x974   :  { %2194 = vtanh.f32 %v1653_v56  ;;  %2068 = vset.pattern.permute.xlu2 %v2392_v7 }
 0x975   :  { %2196 = vpow2.f32 %v2000_v6 }
 0x979   :  { %v1659_v42 = vpop.permute.xlu0 %1658 }
 0x97a   :  { %v2195_v23 = vpop.eup %2194 }
 0x97b   :  { %1670 = vrot.lane.b32.xlu0 %v2195_v23, %s2396_s7  ;;  %v2197_v32 = vpop.eup %2196 }
 0x97c   :  { %v1401_v53 = vadd.f32 1.0, %v2197_v32  ;;  %v1793_v32 = vld [vmem:[#allocation10 + $0x8] sm:$0xff] }
 0x97d   :  { %1816 = vmatpush.msra.mxu0 %v1793_v32 }
 0x97e   :  { %2198 = vrcp.f32 %v1401_v53  ;;  %vm1408_vm11 = vweird.f32 %v1401_v53  ;;  %v1412_v14 = vand.u32 2147483647, %v1401_v53 }
 0x97f   :  { %2200 = vpow2.f32 %v2001_v9 }
 0x980   :  { %vm1413_vm13 = vcmp.eq.f32.partialorder %v1412_v14, 8.507059e+37 }
 0x983   :  { %1732 = vperm.xlu0 %2063, %v3368_v52   ;;  %v1414_v52 = vand.u32 2147483648, %v1401_v53 }
 0x984   :  { %v2199_v1 = vpop.eup %2198 }
 0x985   :  { %v1404_v15 = vmul.f32 %v2199_v1, %v1401_v53  ;;  %vm1409_vm10 = vweird.f32 %v2199_v1  ;;  %v1415_v37 = vor.u32 1.1754944e-38, %v1414_v52  ;;  %v2201_v22 = vpop.eup %2200  ;;  %v1790_v52 = vld [vmem:[#allocation8 + $0x10] sm:$0xff] }
 0x986   :  { %vm1410_vm12 = vmor %vm1408_vm11, %vm1409_vm10  ;;  %v1402_v41 = vadd.f32 1.0, %v2201_v22 }
 0x987   :  { %v1405_v55 = vsub.f32 1.0, %v1404_v15 }
 0x988   :  { %2202 = vrcp.f32 %v1402_v41  ;;  %v1429_v44 = vand.u32 2147483648, %v1402_v41  ;;  %vm1423_vm0 = vweird.f32 %v1402_v41  ;;  %v1427_v33 = vand.u32 2147483647, %v1402_v41 }
 0x989   :  { %v1406_v35 = vmul.f32 %v2199_v1, %v1405_v55 }
 0x98a   :  { %v1430_v31 = vor.u32 1.1754944e-38, %v1429_v44  ;;  %vm1428_vm4 = vcmp.eq.f32.partialorder %v1427_v33, 8.507059e+37 }
 0x98b   :  { %2066 = vset.pattern.permute.xlu0 %v3625_v59  ;;  %v1407_v28 = vadd.f32 %v2199_v1, %v1406_v35  ;;  %v2019_v59 = vsel %vm1751_vm1, 1.0, %v3627_v50 }
 0x98c   :  { %1721 = vperm.xlu0 %2066, %v1702_v29  }
 0x98d   :  { %v1411_v0 = vsel %vm1410_vm12, %v2199_v1, %v1407_v28  ;;  %v1791_v28 = vld [vmem:[#allocation8 + $0x18] sm:$0xff] }
 0x98e   :  { %v1416_v18 = vsel %vm1413_vm13, %v1415_v37, %v1411_v0  ;;  %v2203_v61 = vpop.eup %2202  ;;  %v1789_v0 = vld [vmem:[#allocation8 + $0x8] sm:$0xff] }
 0x98f   :  { %v1656_v20 = vsub.f32 1.0, %v1416_v18  ;;  %v1419_v25 = vmul.f32 %v2203_v61, %v1402_v41  ;;  %vm1424_vm15 = vweird.f32 %v2203_v61 }
 0x990   :  { %vm1425_vm2 = vmor %vm1423_vm0, %vm1424_vm15 }
 0x991   :  { %v1420_v45 = vsub.f32 1.0, %v1419_v25 }
 0x993   :  { %v1421_v48 = vmul.f32 %v2203_v61, %v1420_v45 }
 0x994   :  { %2069 = vset.pattern.permute.xlu0 %v2392_v7  ;;  %v1664_v7 = vmul.f32 %v1659_v42, %v1656_v20  ;;  %v1792_v20 = vld [vmem:[#allocation10] sm:$0xff] }
 0x995   :  { %v1422_v8 = vadd.f32 %v2203_v61, %v1421_v48  ;;  %1817 = vmatpush.msra.mxu0 %v1792_v20 }
 0x997   :  { %v1426_v30 = vsel %vm1425_vm2, %v2203_v61, %v1422_v8 }
 0x998   :  { %v1431_v2 = vsel %vm1428_vm4, %v1430_v31, %v1426_v30 }
 0x999   :  { %v1657_v27 = vsub.f32 1.0, %v1431_v2 }
 0x99b   :  { %v1665_v5 = vmul.f32 %v1661_v24, %v1657_v27 }
 0x9b5   :  { %v1669_v34 = vpop.permute.xlu2 %1668 }
 0x9b6   :  { %v1674_v38 = vmul.f32 %v1669_v34, %v1416_v18 }
 0x9b8   :  { %v1676_v13 = vadd.f32 %v1674_v38, %v1664_v7 }
 0x9ba   :  { %v1687_v57 = vmul.f32 %v2012_v36, %v1676_v13 }
 0x9bc   :  { %1691 = vrot.lane.b32.xlu1 %v1687_v57, %s2396_s7 }
 0x9bd   :  { %v1719_v19 = vpop.permute.xlu2 %1718 }
 0x9be   :  { %vm1723_vm6 = vcmp.eq.s32.totalorder %v2529_v16, %v1719_v19 }
 0x9bf   :  { %v2015_v60 = vsel %vm1723_vm6, 1.0, %v3627_v50 }
 0x9c0   :  { %v1729_v56 = vadd.f32 %v2015_v60, %v2013_v40 }
 0x9c4   :  { %1735 = vperm.xlu1 %2067, %v1702_v29  }
 0x9c6   :  { %v1708_v21 = vpop.permute.xlu2 %1707 }
 0x9c7   :  { %vm1710_vm9 = vcmp.eq.s32.totalorder %v2529_v16, %v1708_v21 }
 0x9c8   :  { %v2014_v55 = vsel %vm1710_vm9, 1.0, %v3627_v50 }
 0x9ed   :  { %v1671_v46 = vpop.permute.xlu0 %1670 }
 0x9ee   :  { %v1675_v62 = vmul.f32 %v1671_v46, %v1431_v2 }
 0x9f0   :  { %v1677_v39 = vadd.f32 %v1675_v62, %v1665_v5 }
 0x9f2   :  { %1693 = vrot.lane.b32.xlu2 %v1677_v39, %s2396_s7 }
 0x9f5   :  { %v1733_v54 = vpop.permute.xlu0 %1732 }
 0x9f6   :  { %vm1737_vm8 = vcmp.eq.s32.totalorder %v2529_v16, %v1733_v54 }
 0x9f7   :  { %v2017_v3 = vsel %vm1737_vm8, 1.0, %v3627_v50 }
 0x9f8   :  { %v1743_v6 = vadd.f32 %v2017_v3, %v1729_v56 }
 0x9fa   :  { %1749 = vperm.xlu2 %2068, %v1702_v29   ;;  %v1757_v29 = vadd.f32 %v2019_v59, %v1743_v6 }
 0x9fe   :  { %v1722_v23 = vpop.permute.xlu0 %1721 }
 0x9ff   :  { %vm1724_vm10 = vcmp.eq.s32.totalorder %v2529_v16, %v1722_v23 }
 0xa00   :  { %v2016_v35 = vsel %vm1724_vm10, 1.0, %v3627_v50 }
 0xa01   :  { %v1730_v14 = vadd.f32 %v2016_v35, %v2014_v55 }
 0xa2e   :  { %v1692_v4 = vpop.permute.xlu1 %1691 }
 0xa2f   :  { %v1697_v43 = vsel %vm269_vm3, %v1692_v4, 0.0 }
 0xa30   :  { %1699 = vst [vmem:[#allocation12] sm:$0xff] %v1697_v43 }
 0xa36   :  { %v1736_v53 = vpop.permute.xlu1 %1735 }
 0xa37   :  { %vm1738_vm11 = vcmp.eq.s32.totalorder %v2529_v16, %v1736_v53 }
 0xa38   :  { %v2018_v12 = vsel %vm1738_vm11, 1.0, %v3627_v50 }
 0xa39   :  { %v1744_v10 = vadd.f32 %v2018_v12, %v1730_v14 }
 0xa4c   :  { %v1694_v1 = vpop.permute.xlu2 %1693 }
 0xa4d   :  { %v1698_v15 = vsel %vm269_vm3, %v1694_v1, 0.0  ;;  %1779 = vmatpush.msra.mxu1 %v1694_v1 }
 0xa4e   :  { %1700 = vst [vmem:[#allocation12 + $0x8] sm:$0xff] %v1698_v15 }
 0xa4f   :  { %1780 = vmatpush.msra.mxu1 %v1692_v4  ;;  %1889 = dma.vmem_to_hbm [thread:$0]  %s1882_s1, 256, %s1884_s26, [#allocation13], %s2383_s16, %s2383_s16, %s2384_s17  }
 0xa50   :  { %2021 = vmatmul.msk.f32.vlgmr.msra.gmra.mxu1 %vm311_vm5, %v1757_v29 }
 0xa51   :  { %1843 = vmatpush.msrb.mxu1 %v1791_v28 }
 0xa53   :  { %1844 = vmatpush.msrb.mxu1 %v1790_v52 }
 0xa54   :  { %v1750_v37 = vpop.permute.xlu2 %1749 }
 0xa55   :  { %vm1752_vm12 = vcmp.eq.s32.totalorder %v2529_v16, %v1750_v37  ;;  %1845 = vmatpush.msrb.mxu1 %v1789_v0 }
 0xa56   :  { %v2020_v18 = vsel %vm1752_vm12, 1.0, %v3627_v50 }
 0xa57   :  { %v1758_v42 = vadd.f32 %v2020_v18, %v1744_v10  ;;  %1846 = vmatpush.msrb.mxu1 %v1788_v47 }
 0xa59   :  { %2022 = vmatmul.msk.f32.gmra.mxu1 %vm311_vm5, %v1758_v42 }
 0xa61   :  { %2025 = vmatmul.msk.f32.vlgmr.msrb.gmra.mxu1 %vm269_vm3, %v2634_v49  ;;  %v2071_v49 = vld [vmem:[%s3568_s11] ss:$0 sm:$0xff] }
 0xa69   :  { %2026 = vmatmul.msk.f32.gmra.mxu1 %vm269_vm3, %v2642_v51 }
 0xacd   :  { %v1782_v34 = vpop.f32.mrf.mxu1 }
 0xace   :  { %2023 = vmatmul.msk.f32.vlgmr.msra.gmra.mxu0 %vm269_vm3, %v1782_v34 }
 0xad6   :  { %v1785_v11 = vpop.f32.mrf.mxu1 }
 0xad7   :  { %2024 = vmatmul.msk.f32.gmra.mxu0 %vm269_vm3, %v1785_v11 }
 0xade   :  { %v1848_v16 = vpop.f32.mrf.mxu1 }
 0xae6   :  { %v1851_v36 = vpop.f32.mrf.mxu1 }
 0xb4b   :  { %v1819_v51 = vpop.f32.mrf.mxu0 }
 0xb4c   :  { %v1849_v7 = vadd.f32 %v1848_v16, %v1819_v51 }
 0xb4e   :  { %v1858_v38 = vadd.f32 %v2071_v49, %v1849_v7 }
 0xb50   :  { %v1860_v50 = vmax.f32 %v1858_v38, 0.0 }
 0xb52   :  { %1862 = vst [vmem:[#allocation11] sm:$0xff] %v1860_v50 }
 0xb54   :  { %v1822_v13 = vpop.f32.mrf.mxu0 }
 0xb55   :  { %v1852_v9 = vadd.f32 %v1851_v36, %v1822_v13 }
 0xb57   :  { %v1859_v57 = vadd.f32 %v2071_v49, %v1852_v9 }
 0xb59   :  { %v1861_v22 = vmax.f32 %v1859_v57, 0.0 }
 0xb5b   :  { %1863 = vst [vmem:[#allocation11 + $0x8] sm:$0xff] %v1861_v22 }
 0xb5c   :  { %1876 = dma.vmem_to_hbm [thread:$0]  %s1869_s28, 256, %s1871_s30, [#allocation4], %s2383_s16, %s2383_s16, %s2384_s17  }
 0xb5d   :  { %2378 = dma.done.wait [#allocation4], 256  }
 0xb5e   :  { %2379 = vsyncadd [#allocation4], 4294967040 }
 0xb5f   :  { %2380 = dma.done.wait [#allocation13], 256  }
 0xb60   :  { %2381 = vsyncadd [#allocation13], 4294967040 }
 0xb61   :  { %1898 = vsyncpa [#allocation3], 1 }
 0xb62   :  { %1899 = vsyncpa [#allocation6], 1 }
 0xb63   :  { %1900 = vsyncpa [#allocation9], 1 }
 0xb64   :  { %1901 = vsyncpa [#allocation4], 1 }
 0xb65   :  { %1902 = vsyncpa [#allocation13], 1 }

</bundles_post_ra>
